<compile_context>
chip_gen: v5e
topology: v5e:2x2
jax: 0.10.0
libtpu: 0.0.40
codegen_flags: <defaults>
</compile_context>

<pallas_src>
import functools
import math

import jax
import jax.numpy as jnp
from jax.experimental import pallas as pl
from jax.experimental.pallas import tpu as pltpu

LN_EPS = 1e-5  # PyTorch layer_norm_eps default


def _layer_norm(v, g, b):
    mu = jnp.mean(v, axis=-1, keepdims=True)
    var = jnp.mean((v - mu) ** 2, axis=-1, keepdims=True)
    return (v - mu) * jax.lax.rsqrt(var + LN_EPS) * g + b


def _encoder_stack_kernel(x_ref, wqkv_ref, bqkv_ref, wo_ref, bo_ref,
                          g1_ref, be1_ref, w1_ref, b1_ref, w2_ref, b2_ref,
                          g2_ref, be2_ref, out_ref, act_ref,
                          *, num_heads, batch, seq):
    """One grid step == one encoder layer applied to the full (N*S, E) slab."""
    layer = pl.program_id(0)

    # Load the input once; activation is carried across layers in VMEM scratch.
    @pl.when(layer == 0)
    def _():
        act_ref[...] = x_ref[...].astype(jnp.float32)

    x = act_ref[...]                                   # (M, E) f32, M = N*S
    M, E = x.shape
    H, B, S = num_heads, batch, seq
    Dh = E // H
    scale = 1.0 / math.sqrt(Dh)

    # ---- self attention ---------------------------------------------------
    # Fused QKV projection over the flattened batch*seq rows (big-M matmul).
    qkv = jnp.dot(x.astype(jnp.bfloat16), wqkv_ref[0],
                  preferred_element_type=jnp.float32) + bqkv_ref[0]  # (M, 3E)

    # Split rows back into (B, S) at the sublane-tile boundary (cheap reshape),
    # then gather heads into one leading batch axis of size H*B.
    qkv3 = qkv.reshape(B, S, 3 * E)

    def split_heads(base):
        parts = [qkv3[:, :, base + h * Dh: base + (h + 1) * Dh]
                 for h in range(H)]                       # each (B, S, Dh)
        return jnp.stack(parts, axis=0).reshape(H * B, S, Dh)

    q = split_heads(0)
    k = split_heads(E)
    v = split_heads(2 * E)

    # Batched attention over all (head, batch) pairs, bf16 MXU operands.
    s = jnp.einsum('bqd,bkd->bqk',
                   q.astype(jnp.bfloat16), k.astype(jnp.bfloat16),
                   preferred_element_type=jnp.float32) * scale       # (H*B,S,S)
    s = s - jnp.max(s, axis=-1, keepdims=True)
    p = jnp.exp(s)
    p = p * pl.reciprocal(jnp.sum(p, axis=-1, keepdims=True), approx=True)
    o = jnp.einsum('bqk,bkd->bqd',
                   p.astype(jnp.bfloat16), v.astype(jnp.bfloat16),
                   preferred_element_type=jnp.float32)               # (H*B,S,Dh)

    # Per-head output projection, summed over heads (avoids a lane concat).
    o = o.reshape(H, M, Dh)
    attn = jnp.einsum('hmd,hde->hme',
                      o.astype(jnp.bfloat16), wo_ref[0],
                      preferred_element_type=jnp.float32)            # (H, M, E)
    attn_out = jnp.sum(attn, axis=0) + bo_ref[0]

    # residual + LayerNorm1 (post-norm, PyTorch default norm_first=False)
    y = _layer_norm(x + attn_out, g1_ref[0], be1_ref[0])

    # ---- feed forward (linear -> ReLU -> linear) ---------------------------
    h1 = jnp.dot(y.astype(jnp.bfloat16), w1_ref[0],
                 preferred_element_type=jnp.float32) + b1_ref[0]
    h1 = jnp.maximum(h1, 0.0).astype(jnp.bfloat16)       # bf16 right after ReLU
    ff = jnp.dot(h1, w2_ref[0], preferred_element_type=jnp.float32) + b2_ref[0]

    # residual + LayerNorm2
    z = _layer_norm(y + ff, g2_ref[0], be2_ref[0])

    act_ref[...] = z
    out_ref[...] = z.astype(out_ref.dtype)


def transformer_encoder(x_sne, params, num_heads):
    """x_sne: (S, N, E) f32 (PyTorch batch_first=False). Returns (S, N, E)."""
    S, N, E = x_sne.shape
    (wqkv, bqkv, wo, bo, g1, be1, w1, b1, w2, b2, g2, be2) = params
    L = wqkv.shape[0]
    dff = w1.shape[-1]
    H = num_heads
    Dh = E // H
    M = N * S

    x_flat = jnp.transpose(x_sne, (1, 0, 2)).reshape(M, E)

    # Activation: single full block, resident across all layer iterations.
    def act_spec():
        return pl.BlockSpec((M, E), lambda l: (0, 0))

    # Stacked weights: leading layer axis, index_map selects layer l so the
    # next layer's weights are prefetched while the current one computes.
    def wspec(shape):
        nd = len(shape)
        return pl.BlockSpec((1,) + shape, lambda l, _nd=nd: (l,) + (0,) * _nd)

    flops_layer = (2 * M * E * 3 * E          # QKV projection
                   + 2 * (N * H) * S * S * Dh * 2   # scores + PV
                   + 2 * M * E * E            # output projection
                   + 2 * M * E * dff * 2)     # FFN
    trans_layer = N * H * S * S + N * H * S + 2 * M   # exp + recip + rsqrt
    weight_bytes = int(sum(int(w.size) * w.dtype.itemsize for w in params))
    cost = pl.CostEstimate(flops=int(L * flops_layer),
                           transcendentals=int(L * trans_layer),
                           bytes_accessed=int(2 * M * E * 4 + weight_bytes))

    kernel = functools.partial(_encoder_stack_kernel,
                               num_heads=H, batch=N, seq=S)
    out_flat = pl.pallas_call(
        kernel,
        out_shape=jax.ShapeDtypeStruct((M, E), jnp.float32),
        grid=(L,),
        in_specs=[
            act_spec(),                                   # x (read at layer 0)
            wspec((E, 3 * E)), wspec((1, 3 * E)),          # fused QKV
            wspec((H, Dh, E)), wspec((1, E)),              # per-head out proj
            wspec((1, E)), wspec((1, E)),                  # LN1 gamma/beta
            wspec((E, dff)), wspec((1, dff)),              # FFN linear1
            wspec((dff, E)), wspec((1, E)),                # FFN linear2
            wspec((1, E)), wspec((1, E)),                  # LN2 gamma/beta
        ],
        out_specs=act_spec(),
        scratch_shapes=[pltpu.VMEM((M, E), jnp.float32)],  # activation carry
        compiler_params=pltpu.CompilerParams(
            dimension_semantics=("arbitrary",),            # layers are sequential
            vmem_limit_bytes=32 << 20),
        cost_estimate=cost,
    )(x_flat, wqkv, bqkv, wo, bo, g1, be1, w1, b1, w2, b2, g2, be2)

    return jnp.transpose(out_flat.reshape(N, S, E), (1, 0, 2))


def _init_layer_params(key, d_model, num_heads, dff):
    """Synthetic deterministic parameters; matmul weights stored transposed
    (in_features, out_features), bf16 for streaming; out-proj stored per head
    as (H, Dh, E)."""
    ks = jax.random.split(key, 8)
    Dh = d_model // num_heads

    def u(k, shape, fan_in):
        b = 1.0 / math.sqrt(fan_in)
        return jax.random.uniform(k, shape, jnp.float32, -b, b)

    wqkv = u(ks[0], (d_model, 3 * d_model), d_model).astype(jnp.bfloat16)
    bqkv = u(ks[1], (1, 3 * d_model), d_model)
    wo = u(ks[2], (d_model, d_model), d_model).reshape(
        num_heads, Dh, d_model).astype(jnp.bfloat16)
    bo = u(ks[3], (1, d_model), d_model)
    w1 = u(ks[4], (d_model, dff), d_model).astype(jnp.bfloat16)
    b1 = u(ks[5], (1, dff), d_model)
    w2 = u(ks[6], (dff, d_model), dff).astype(jnp.bfloat16)
    b2 = u(ks[7], (1, d_model), dff)
    g1 = jnp.ones((1, d_model), jnp.float32)
    be1 = jnp.zeros((1, d_model), jnp.float32)
    g2 = jnp.ones((1, d_model), jnp.float32)
    be2 = jnp.zeros((1, d_model), jnp.float32)
    return (wqkv, bqkv, wo, bo, g1, be1, w1, b1, w2, b2, g2, be2)


def init_stacked_params(key, num_layers, d_model, num_heads, dff):
    keys = jax.random.split(key, num_layers)
    per_layer = [_init_layer_params(k, d_model, num_heads, dff) for k in keys]
    return tuple(jnp.stack([p[i] for p in per_layer], axis=0) for i in range(12))


def reference_encoder(x_sne, params, num_heads):
    """Pure-JAX reference with matching math (bf16 matmul operands, f32 acc)."""
    (wqkv, bqkv, wo, bo, g1, be1, w1, b1, w2, b2, g2, be2) = params
    L = wqkv.shape[0]
    x = jnp.transpose(x_sne, (1, 0, 2)).astype(jnp.float32)   # (N, S, E)
    N, S, E = x.shape
    H = num_heads
    Dh = E // H
    scale = 1.0 / math.sqrt(Dh)

    def ln(v, g, b):
        mu = jnp.mean(v, axis=-1, keepdims=True)
        var = jnp.mean((v - mu) ** 2, axis=-1, keepdims=True)
        return (v - mu) * jax.lax.rsqrt(var + LN_EPS) * g + b

    for l in range(L):
        qkv = jnp.einsum('nse,ef->nsf', x.astype(jnp.bfloat16), wqkv[l],
                         preferred_element_type=jnp.float32) + bqkv[l]
        q = qkv[..., :E].reshape(N, S, H, Dh)
        k = qkv[..., E:2 * E].reshape(N, S, H, Dh)
        v = qkv[..., 2 * E:].reshape(N, S, H, Dh)
        s = jnp.einsum('nqhd,nkhd->nhqk',
                       q.astype(jnp.bfloat16), k.astype(jnp.bfloat16),
                       preferred_element_type=jnp.float32) * scale
        p = jax.nn.softmax(s, axis=-1)
        o = jnp.einsum('nhqk,nkhd->nqhd',
                       p.astype(jnp.bfloat16), v.astype(jnp.bfloat16),
                       preferred_element_type=jnp.float32).reshape(N, S, E)
        attn_out = jnp.einsum('nse,ef->nsf', o.astype(jnp.bfloat16),
                              wo[l].reshape(E, E),
                              preferred_element_type=jnp.float32) + bo[l]
        y = ln(x + attn_out, g1[l], be1[l])
        h1 = jnp.maximum(jnp.einsum('nse,ef->nsf', y.astype(jnp.bfloat16), w1[l],
                                    preferred_element_type=jnp.float32) + b1[l],
                         0.0)
        ff = jnp.einsum('nsf,fe->nse', h1.astype(jnp.bfloat16), w2[l],
                        preferred_element_type=jnp.float32) + b2[l]
        x = ln(y + ff, g2[l], be2[l])
    return jnp.transpose(x, (1, 0, 2))


if __name__ == "__main__":
    # Small shapes consistent with the module: d_model=32, 4 heads, 2 layers,
    # seq=8, batch=2; dim_feedforward keeps the PyTorch default (2048).
    d_model, num_heads, num_layers = 32, 4, 2
    dim_feedforward = 2048
    seq, batch = 8, 2

    key = jax.random.PRNGKey(0)
    kx, kp = jax.random.split(key)
    x = jax.random.normal(kx, (seq, batch, d_model), jnp.float32)   # (S, N, E)

    params = init_stacked_params(kp, num_layers, d_model, num_heads,
                                 dim_feedforward)

    fwd = jax.jit(lambda xx: transformer_encoder(xx, params, num_heads))
    out = fwd(x)
    jax.block_until_ready(out)

    ref = reference_encoder(x, params, num_heads)
    assert out.shape == (seq, batch, d_model)
    max_err = float(jnp.max(jnp.abs(out - ref)))
    assert jnp.allclose(out, ref, atol=2e-2, rtol=2e-2), max_err

    print("KERNEL_OK")
</pallas_src>

<mosaic_0001>
module attributes {stable_mosaic.version = 11 : i64} {
  func.func @_encoder_stack_kernel(%arg0: i32, %arg1: memref<16x32xf32, #tpu.memory_space<vmem>>, %arg2: memref<1x32x96xbf16, #tpu.memory_space<vmem>>, %arg3: memref<1x1x96xf32, #tpu.memory_space<vmem>>, %arg4: memref<1x4x8x32xbf16, #tpu.memory_space<vmem>>, %arg5: memref<1x1x32xf32, #tpu.memory_space<vmem>>, %arg6: memref<1x1x32xf32, #tpu.memory_space<vmem>>, %arg7: memref<1x1x32xf32, #tpu.memory_space<vmem>>, %arg8: memref<1x32x2048xbf16, #tpu.memory_space<vmem>>, %arg9: memref<1x1x2048xf32, #tpu.memory_space<vmem>>, %arg10: memref<1x2048x32xbf16, #tpu.memory_space<vmem>>, %arg11: memref<1x1x32xf32, #tpu.memory_space<vmem>>, %arg12: memref<1x1x32xf32, #tpu.memory_space<vmem>>, %arg13: memref<1x1x32xf32, #tpu.memory_space<vmem>>, %arg14: memref<16x32xf32, #tpu.memory_space<vmem>>, %arg15: memref<16x32xf32, #tpu.memory_space<vmem>>) attributes {dimension_semantics = [#tpu.dimension_semantics<arbitrary>], iteration_bounds = array<i64: 2>, scalar_prefetch = 0 : i64, scratch_operands = 1 : i64, tpu.core_type = #tpu.core_type<tc>, window_params = [{pipeline_mode = #tpu.pipeline_mode<synchronous>, transform_indices = @transform_0, window_bounds = array<i64: 16, 32>}, {transform_indices = @transform_1, window_bounds = array<i64: 1, 32, 96>}, {transform_indices = @transform_2, window_bounds = array<i64: 1, 1, 96>}, {transform_indices = @transform_3, window_bounds = array<i64: 1, 4, 8, 32>}, {transform_indices = @transform_4, window_bounds = array<i64: 1, 1, 32>}, {transform_indices = @transform_5, window_bounds = array<i64: 1, 1, 32>}, {transform_indices = @transform_6, window_bounds = array<i64: 1, 1, 32>}, {transform_indices = @transform_7, window_bounds = array<i64: 1, 32, 2048>}, {transform_indices = @transform_8, window_bounds = array<i64: 1, 1, 2048>}, {transform_indices = @transform_9, window_bounds = array<i64: 1, 2048, 32>}, {transform_indices = @transform_10, window_bounds = array<i64: 1, 1, 32>}, {transform_indices = @transform_11, window_bounds = array<i64: 1, 1, 32>}, {transform_indices = @transform_12, window_bounds = array<i64: 1, 1, 32>}, {pipeline_mode = #tpu.pipeline_mode<synchronous>, transform_indices = @transform_13, window_bounds = array<i64: 16, 32>}]} {
    %c0_i32 = arith.constant 0 : i32
    %0 = arith.cmpi eq, %arg0, %c0_i32 : i32
    %1 = arith.extui %0 : i1 to i32
    %c0_i32_0 = arith.constant 0 : i32
    %2 = arith.cmpi ne, %1, %c0_i32_0 : i32
    scf.if %2 {
      %c0_63 = arith.constant 0 : index
      %c0_64 = arith.constant 0 : index
      %145 = vector.load %arg1[%c0_63, %c0_64] : memref<16x32xf32, #tpu.memory_space<vmem>>, vector<16x32xf32>
      %c0_65 = arith.constant 0 : index
      %c0_66 = arith.constant 0 : index
      %146 = vector.load %arg15[%c0_65, %c0_66] : memref<16x32xf32, #tpu.memory_space<vmem>>, vector<16x32xf32>
      tpu.vector_store %arg15[%c0_65, %c0_66], %145 {strides = array<i32>} : memref<16x32xf32, #tpu.memory_space<vmem>>, vector<16x32xf32>,
    } else {
    }
    %c0 = arith.constant 0 : index
    %c0_1 = arith.constant 0 : index
    %3 = vector.load %arg15[%c0, %c0_1] : memref<16x32xf32, #tpu.memory_space<vmem>>, vector<16x32xf32>
    %4 = arith.truncf %3 : vector<16x32xf32> to vector<16x32xbf16>
    %c0_2 = arith.constant 0 : index
    %c0_3 = arith.constant 0 : index
    %c0_4 = arith.constant 0 : index
    %5 = vector.load %arg2[%c0_2, %c0_3, %c0_4] : memref<1x32x96xbf16, #tpu.memory_space<vmem>>, vector<1x32x96xbf16>
    %6 = vector.shape_cast %5 : vector<1x32x96xbf16> to vector<32x96xbf16>
    %cst = arith.constant dense<0.000000e+00> : vector<16x96xf32>
    %7 = tpu.matmul %4, %6, %cst {dimension_numbers = #tpu.dot_dimension_numbers<[1], [0], [0], [1], [0, 0, 1, 1], [], []>} : vector<16x32xbf16>, vector<32x96xbf16>, vector<16x96xf32> -> vector<16x96xf32>
    %c0_5 = arith.constant 0 : index
    %c0_6 = arith.constant 0 : index
    %c0_7 = arith.constant 0 : index
    %8 = vector.load %arg3[%c0_5, %c0_6, %c0_7] : memref<1x1x96xf32, #tpu.memory_space<vmem>>, vector<1x1x96xf32>
    %9 = vector.shape_cast %8 : vector<1x1x96xf32> to vector<1x96xf32>
    %10 = vector.broadcast %9 : vector<1x96xf32> to vector<16x96xf32>
    %11 = arith.addf %7, %10 : vector<16x96xf32>
    %12 = vector.shape_cast %11 : vector<16x96xf32> to vector<2x8x96xf32>
    %13 = vector.extract_strided_slice %12 {offsets = [0, 0, 0], sizes = [2, 8, 8], strides = [1, 1, 1]} : vector<2x8x96xf32> to vector<2x8x8xf32>
    %14 = vector.extract_strided_slice %12 {offsets = [0, 0, 8], sizes = [2, 8, 8], strides = [1, 1, 1]} : vector<2x8x96xf32> to vector<2x8x8xf32>
    %15 = vector.extract_strided_slice %12 {offsets = [0, 0, 16], sizes = [2, 8, 8], strides = [1, 1, 1]} : vector<2x8x96xf32> to vector<2x8x8xf32>
    %16 = vector.extract_strided_slice %12 {offsets = [0, 0, 24], sizes = [2, 8, 8], strides = [1, 1, 1]} : vector<2x8x96xf32> to vector<2x8x8xf32>
    %17 = vector.shape_cast %13 : vector<2x8x8xf32> to vector<1x2x8x8xf32>
    %18 = vector.shape_cast %14 : vector<2x8x8xf32> to vector<1x2x8x8xf32>
    %19 = vector.shape_cast %15 : vector<2x8x8xf32> to vector<1x2x8x8xf32>
    %20 = vector.shape_cast %16 : vector<2x8x8xf32> to vector<1x2x8x8xf32>
    %21 = tpu.concatenate %17, %18, %19, %20 in 0 : vector<1x2x8x8xf32>, vector<1x2x8x8xf32>, vector<1x2x8x8xf32>, vector<1x2x8x8xf32> -> vector<4x2x8x8xf32>
    %22 = vector.shape_cast %21 : vector<4x2x8x8xf32> to vector<8x8x8xf32>
    %23 = vector.extract_strided_slice %12 {offsets = [0, 0, 32], sizes = [2, 8, 8], strides = [1, 1, 1]} : vector<2x8x96xf32> to vector<2x8x8xf32>
    %24 = vector.extract_strided_slice %12 {offsets = [0, 0, 40], sizes = [2, 8, 8], strides = [1, 1, 1]} : vector<2x8x96xf32> to vector<2x8x8xf32>
    %25 = vector.extract_strided_slice %12 {offsets = [0, 0, 48], sizes = [2, 8, 8], strides = [1, 1, 1]} : vector<2x8x96xf32> to vector<2x8x8xf32>
    %26 = vector.extract_strided_slice %12 {offsets = [0, 0, 56], sizes = [2, 8, 8], strides = [1, 1, 1]} : vector<2x8x96xf32> to vector<2x8x8xf32>
    %27 = vector.shape_cast %23 : vector<2x8x8xf32> to vector<1x2x8x8xf32>
    %28 = vector.shape_cast %24 : vector<2x8x8xf32> to vector<1x2x8x8xf32>
    %29 = vector.shape_cast %25 : vector<2x8x8xf32> to vector<1x2x8x8xf32>
    %30 = vector.shape_cast %26 : vector<2x8x8xf32> to vector<1x2x8x8xf32>
    %31 = tpu.concatenate %27, %28, %29, %30 in 0 : vector<1x2x8x8xf32>, vector<1x2x8x8xf32>, vector<1x2x8x8xf32>, vector<1x2x8x8xf32> -> vector<4x2x8x8xf32>
    %32 = vector.shape_cast %31 : vector<4x2x8x8xf32> to vector<8x8x8xf32>
    %33 = vector.extract_strided_slice %12 {offsets = [0, 0, 64], sizes = [2, 8, 8], strides = [1, 1, 1]} : vector<2x8x96xf32> to vector<2x8x8xf32>
    %34 = vector.extract_strided_slice %12 {offsets = [0, 0, 72], sizes = [2, 8, 8], strides = [1, 1, 1]} : vector<2x8x96xf32> to vector<2x8x8xf32>
    %35 = vector.extract_strided_slice %12 {offsets = [0, 0, 80], sizes = [2, 8, 8], strides = [1, 1, 1]} : vector<2x8x96xf32> to vector<2x8x8xf32>
    %36 = vector.extract_strided_slice %12 {offsets = [0, 0, 88], sizes = [2, 8, 8], strides = [1, 1, 1]} : vector<2x8x96xf32> to vector<2x8x8xf32>
    %37 = vector.shape_cast %33 : vector<2x8x8xf32> to vector<1x2x8x8xf32>
    %38 = vector.shape_cast %34 : vector<2x8x8xf32> to vector<1x2x8x8xf32>
    %39 = vector.shape_cast %35 : vector<2x8x8xf32> to vector<1x2x8x8xf32>
    %40 = vector.shape_cast %36 : vector<2x8x8xf32> to vector<1x2x8x8xf32>
    %41 = tpu.concatenate %37, %38, %39, %40 in 0 : vector<1x2x8x8xf32>, vector<1x2x8x8xf32>, vector<1x2x8x8xf32>, vector<1x2x8x8xf32> -> vector<4x2x8x8xf32>
    %42 = vector.shape_cast %41 : vector<4x2x8x8xf32> to vector<8x8x8xf32>
    %43 = arith.truncf %22 : vector<8x8x8xf32> to vector<8x8x8xbf16>
    %44 = arith.truncf %32 : vector<8x8x8xf32> to vector<8x8x8xbf16>
    "tpu.trace_start"() <{level = 10 : i32, message = "bqd,bkd->bqk"}> : () -> ()
    %cst_8 = arith.constant dense<0.000000e+00> : vector<8x8x8xf32>
    %45 = tpu.matmul %43, %44, %cst_8 {dimension_numbers = #tpu.dot_dimension_numbers<[2], [2], [1], [1], [0, 0, 0, 1, 1, 1], [0], [0]>} : vector<8x8x8xbf16>, vector<8x8x8xbf16>, vector<8x8x8xf32> -> vector<8x8x8xf32>
    "tpu.trace_stop"() : () -> ()
    %cst_9 = arith.constant 0.353553385 : f32
    %46 = vector.broadcast %cst_9 : f32 to vector<8x8x8xf32>
    %47 = arith.mulf %45, %46 : vector<8x8x8xf32>
    %cst_10 = arith.constant dense<0xFF800000> : vector<8x8xf32>
    %48 = vector.multi_reduction <maximumf>, %47, %cst_10 [2] : vector<8x8x8xf32> to vector<8x8xf32>
    %49 = vector.shape_cast %48 : vector<8x8xf32> to vector<8x8x1xf32>
    %50 = vector.broadcast %49 : vector<8x8x1xf32> to vector<8x8x8xf32>
    %51 = arith.subf %47, %50 : vector<8x8x8xf32>
    %52 = math.exp %51 : vector<8x8x8xf32>
    %cst_11 = arith.constant dense<0.000000e+00> : vector<8x8xf32>
    %53 = vector.multi_reduction <add>, %52, %cst_11 [2] : vector<8x8x8xf32> to vector<8x8xf32>
    %54 = vector.shape_cast %53 : vector<8x8xf32> to vector<8x8x1xf32>
    %55 = tpu.reciprocal %54 {approx = true} : vector<8x8x1xf32> -> vector<8x8x1xf32>
    %56 = vector.broadcast %55 : vector<8x8x1xf32> to vector<8x8x8xf32>
    %57 = arith.mulf %52, %56 : vector<8x8x8xf32>
    %58 = arith.truncf %57 : vector<8x8x8xf32> to vector<8x8x8xbf16>
    %59 = arith.truncf %42 : vector<8x8x8xf32> to vector<8x8x8xbf16>
    "tpu.trace_start"() <{level = 10 : i32, message = "bqk,bkd->bqd"}> : () -> ()
    %cst_12 = arith.constant dense<0.000000e+00> : vector<8x8x8xf32>
    %60 = tpu.matmul %58, %59, %cst_12 {dimension_numbers = #tpu.dot_dimension_numbers<[2], [1], [1], [2], [0, 0, 0, 1, 1, 2], [0], [0]>} : vector<8x8x8xbf16>, vector<8x8x8xbf16>, vector<8x8x8xf32> -> vector<8x8x8xf32>
    "tpu.trace_stop"() : () -> ()
    %61 = vector.shape_cast %60 : vector<8x8x8xf32> to vector<4x16x8xf32>
    %62 = arith.truncf %61 : vector<4x16x8xf32> to vector<4x16x8xbf16>
    %c0_13 = arith.constant 0 : index
    %c0_14 = arith.constant 0 : index
    %c0_15 = arith.constant 0 : index
    %c0_16 = arith.constant 0 : index
    %63 = vector.load %arg4[%c0_13, %c0_14, %c0_15, %c0_16] : memref<1x4x8x32xbf16, #tpu.memory_space<vmem>>, vector<1x4x8x32xbf16>
    %64 = vector.shape_cast %63 : vector<1x4x8x32xbf16> to vector<4x8x32xbf16>
    "tpu.trace_start"() <{level = 10 : i32, message = "hmd,hde->hme"}> : () -> ()
    %cst_17 = arith.constant dense<0.000000e+00> : vector<4x16x32xf32>
    %65 = tpu.matmul %62, %64, %cst_17 {dimension_numbers = #tpu.dot_dimension_numbers<[2], [1], [1], [2], [0, 0, 0, 1, 1, 2], [0], [0]>} : vector<4x16x8xbf16>, vector<4x8x32xbf16>, vector<4x16x32xf32> -> vector<4x16x32xf32>
    "tpu.trace_stop"() : () -> ()
    %cst_18 = arith.constant dense<0.000000e+00> : vector<16x32xf32>
    %66 = vector.multi_reduction <add>, %65, %cst_18 [0] : vector<4x16x32xf32> to vector<16x32xf32>
    %c0_19 = arith.constant 0 : index
    %c0_20 = arith.constant 0 : index
    %c0_21 = arith.constant 0 : index
    %67 = vector.load %arg5[%c0_19, %c0_20, %c0_21] : memref<1x1x32xf32, #tpu.memory_space<vmem>>, vector<1x1x32xf32>
    %68 = vector.shape_cast %67 : vector<1x1x32xf32> to vector<1x32xf32>
    %69 = vector.broadcast %68 : vector<1x32xf32> to vector<16x32xf32>
    %70 = arith.addf %66, %69 : vector<16x32xf32>
    %71 = arith.addf %3, %70 : vector<16x32xf32>
    %c0_22 = arith.constant 0 : index
    %c0_23 = arith.constant 0 : index
    %c0_24 = arith.constant 0 : index
    %72 = vector.load %arg6[%c0_22, %c0_23, %c0_24] : memref<1x1x32xf32, #tpu.memory_space<vmem>>, vector<1x1x32xf32>
    %73 = vector.shape_cast %72 : vector<1x1x32xf32> to vector<1x32xf32>
    %c0_25 = arith.constant 0 : index
    %c0_26 = arith.constant 0 : index
    %c0_27 = arith.constant 0 : index
    %74 = vector.load %arg7[%c0_25, %c0_26, %c0_27] : memref<1x1x32xf32, #tpu.memory_space<vmem>>, vector<1x1x32xf32>
    %75 = vector.shape_cast %74 : vector<1x1x32xf32> to vector<1x32xf32>
    %cst_28 = arith.constant dense<0.000000e+00> : vector<16xf32>
    %76 = vector.multi_reduction <add>, %71, %cst_28 [1] : vector<16x32xf32> to vector<16xf32>
    %77 = vector.shape_cast %76 : vector<16xf32> to vector<16x1xf32>
    %cst_29 = arith.constant 3.200000e+01 : f32
    %78 = vector.broadcast %cst_29 : f32 to vector<16x1xf32>
    %79 = arith.divf %77, %78 : vector<16x1xf32>
    %80 = vector.broadcast %79 : vector<16x1xf32> to vector<16x32xf32>
    %81 = arith.subf %71, %80 : vector<16x32xf32>
    %82 = arith.mulf %81, %81 : vector<16x32xf32>
    %cst_30 = arith.constant dense<0.000000e+00> : vector<16xf32>
    %83 = vector.multi_reduction <add>, %82, %cst_30 [1] : vector<16x32xf32> to vector<16xf32>
    %84 = vector.shape_cast %83 : vector<16xf32> to vector<16x1xf32>
    %cst_31 = arith.constant 3.200000e+01 : f32
    %85 = vector.broadcast %cst_31 : f32 to vector<16x1xf32>
    %86 = arith.divf %84, %85 : vector<16x1xf32>
    %87 = vector.broadcast %79 : vector<16x1xf32> to vector<16x32xf32>
    %88 = arith.subf %71, %87 : vector<16x32xf32>
    %cst_32 = arith.constant 9.99999974E-6 : f32
    %89 = vector.broadcast %cst_32 : f32 to vector<16x1xf32>
    %90 = arith.addf %86, %89 : vector<16x1xf32>
    %91 = math.rsqrt %90 : vector<16x1xf32>
    %92 = vector.broadcast %91 : vector<16x1xf32> to vector<16x32xf32>
    %93 = arith.mulf %88, %92 : vector<16x32xf32>
    %94 = vector.broadcast %73 : vector<1x32xf32> to vector<16x32xf32>
    %95 = arith.mulf %93, %94 : vector<16x32xf32>
    %96 = vector.broadcast %75 : vector<1x32xf32> to vector<16x32xf32>
    %97 = arith.addf %95, %96 : vector<16x32xf32>
    %98 = arith.truncf %97 : vector<16x32xf32> to vector<16x32xbf16>
    %c0_33 = arith.constant 0 : index
    %c0_34 = arith.constant 0 : index
    %c0_35 = arith.constant 0 : index
    %99 = vector.load %arg8[%c0_33, %c0_34, %c0_35] : memref<1x32x2048xbf16, #tpu.memory_space<vmem>>, vector<1x32x2048xbf16>
    %100 = vector.shape_cast %99 : vector<1x32x2048xbf16> to vector<32x2048xbf16>
    %cst_36 = arith.constant dense<0.000000e+00> : vector<16x2048xf32>
    %101 = tpu.matmul %98, %100, %cst_36 {dimension_numbers = #tpu.dot_dimension_numbers<[1], [0], [0], [1], [0, 0, 1, 1], [], []>} : vector<16x32xbf16>, vector<32x2048xbf16>, vector<16x2048xf32> -> vector<16x2048xf32>
    %c0_37 = arith.constant 0 : index
    %c0_38 = arith.constant 0 : index
    %c0_39 = arith.constant 0 : index
    %102 = vector.load %arg9[%c0_37, %c0_38, %c0_39] : memref<1x1x2048xf32, #tpu.memory_space<vmem>>, vector<1x1x2048xf32>
    %103 = vector.shape_cast %102 : vector<1x1x2048xf32> to vector<1x2048xf32>
    %104 = vector.broadcast %103 : vector<1x2048xf32> to vector<16x2048xf32>
    %105 = arith.addf %101, %104 : vector<16x2048xf32>
    %cst_40 = arith.constant 0.000000e+00 : f32
    %106 = vector.broadcast %cst_40 : f32 to vector<16x2048xf32>
    %107 = arith.maximumf %105, %106 : vector<16x2048xf32>
    %108 = arith.truncf %107 : vector<16x2048xf32> to vector<16x2048xbf16>
    %c0_41 = arith.constant 0 : index
    %c0_42 = arith.constant 0 : index
    %c0_43 = arith.constant 0 : index
    %109 = vector.load %arg10[%c0_41, %c0_42, %c0_43] : memref<1x2048x32xbf16, #tpu.memory_space<vmem>>, vector<1x2048x32xbf16>
    %110 = vector.shape_cast %109 : vector<1x2048x32xbf16> to vector<2048x32xbf16>
    %cst_44 = arith.constant dense<0.000000e+00> : vector<16x32xf32>
    %111 = tpu.matmul %108, %110, %cst_44 {dimension_numbers = #tpu.dot_dimension_numbers<[1], [0], [0], [1], [0, 0, 1, 1], [], []>} : vector<16x2048xbf16>, vector<2048x32xbf16>, vector<16x32xf32> -> vector<16x32xf32>
    %c0_45 = arith.constant 0 : index
    %c0_46 = arith.constant 0 : index
    %c0_47 = arith.constant 0 : index
    %112 = vector.load %arg11[%c0_45, %c0_46, %c0_47] : memref<1x1x32xf32, #tpu.memory_space<vmem>>, vector<1x1x32xf32>
    %113 = vector.shape_cast %112 : vector<1x1x32xf32> to vector<1x32xf32>
    %114 = vector.broadcast %113 : vector<1x32xf32> to vector<16x32xf32>
    %115 = arith.addf %111, %114 : vector<16x32xf32>
    %116 = arith.addf %97, %115 : vector<16x32xf32>
    %c0_48 = arith.constant 0 : index
    %c0_49 = arith.constant 0 : index
    %c0_50 = arith.constant 0 : index
    %117 = vector.load %arg12[%c0_48, %c0_49, %c0_50] : memref<1x1x32xf32, #tpu.memory_space<vmem>>, vector<1x1x32xf32>
    %118 = vector.shape_cast %117 : vector<1x1x32xf32> to vector<1x32xf32>
    %c0_51 = arith.constant 0 : index
    %c0_52 = arith.constant 0 : index
    %c0_53 = arith.constant 0 : index
    %119 = vector.load %arg13[%c0_51, %c0_52, %c0_53] : memref<1x1x32xf32, #tpu.memory_space<vmem>>, vector<1x1x32xf32>
    %120 = vector.shape_cast %119 : vector<1x1x32xf32> to vector<1x32xf32>
    %cst_54 = arith.constant dense<0.000000e+00> : vector<16xf32>
    %121 = vector.multi_reduction <add>, %116, %cst_54 [1] : vector<16x32xf32> to vector<16xf32>
    %122 = vector.shape_cast %121 : vector<16xf32> to vector<16x1xf32>
    %cst_55 = arith.constant 3.200000e+01 : f32
    %123 = vector.broadcast %cst_55 : f32 to vector<16x1xf32>
    %124 = arith.divf %122, %123 : vector<16x1xf32>
    %125 = vector.broadcast %124 : vector<16x1xf32> to vector<16x32xf32>
    %126 = arith.subf %116, %125 : vector<16x32xf32>
    %127 = arith.mulf %126, %126 : vector<16x32xf32>
    %cst_56 = arith.constant dense<0.000000e+00> : vector<16xf32>
    %128 = vector.multi_reduction <add>, %127, %cst_56 [1] : vector<16x32xf32> to vector<16xf32>
    %129 = vector.shape_cast %128 : vector<16xf32> to vector<16x1xf32>
    %cst_57 = arith.constant 3.200000e+01 : f32
    %130 = vector.broadcast %cst_57 : f32 to vector<16x1xf32>
    %131 = arith.divf %129, %130 : vector<16x1xf32>
    %132 = vector.broadcast %124 : vector<16x1xf32> to vector<16x32xf32>
    %133 = arith.subf %116, %132 : vector<16x32xf32>
    %cst_58 = arith.constant 9.99999974E-6 : f32
    %134 = vector.broadcast %cst_58 : f32 to vector<16x1xf32>
    %135 = arith.addf %131, %134 : vector<16x1xf32>
    %136 = math.rsqrt %135 : vector<16x1xf32>
    %137 = vector.broadcast %136 : vector<16x1xf32> to vector<16x32xf32>
    %138 = arith.mulf %133, %137 : vector<16x32xf32>
    %139 = vector.broadcast %118 : vector<1x32xf32> to vector<16x32xf32>
    %140 = arith.mulf %138, %139 : vector<16x32xf32>
    %141 = vector.broadcast %120 : vector<1x32xf32> to vector<16x32xf32>
    %142 = arith.addf %140, %141 : vector<16x32xf32>
    %c0_59 = arith.constant 0 : index
    %c0_60 = arith.constant 0 : index
    %143 = vector.load %arg15[%c0_59, %c0_60] : memref<16x32xf32, #tpu.memory_space<vmem>>, vector<16x32xf32>
    tpu.vector_store %arg15[%c0_59, %c0_60], %142 {strides = array<i32>} : memref<16x32xf32, #tpu.memory_space<vmem>>, vector<16x32xf32>,
    %c0_61 = arith.constant 0 : index
    %c0_62 = arith.constant 0 : index
    %144 = vector.load %arg14[%c0_61, %c0_62] : memref<16x32xf32, #tpu.memory_space<vmem>>, vector<16x32xf32>
    tpu.vector_store %arg14[%c0_61, %c0_62], %142 {strides = array<i32>} : memref<16x32xf32, #tpu.memory_space<vmem>>, vector<16x32xf32>,
    return
  }
  func.func @transform_0(%arg0: i32) -> (i32, i32) {
    %c0_i32 = arith.constant 0 : i32
    %c0_i32_0 = arith.constant 0 : i32
    %c0_i32_1 = arith.constant 0 : i32
    return %c0_i32, %c0_i32_0 : i32, i32
  }
  func.func @transform_1(%arg0: i32) -> (i32, i32, i32) {
    %c0_i32 = arith.constant 0 : i32
    %c0_i32_0 = arith.constant 0 : i32
    %c0_i32_1 = arith.constant 0 : i32
    return %arg0, %c0_i32, %c0_i32_0 : i32, i32, i32
  }
  func.func @transform_2(%arg0: i32) -> (i32, i32, i32) {
    %c0_i32 = arith.constant 0 : i32
    %c0_i32_0 = arith.constant 0 : i32
    %c0_i32_1 = arith.constant 0 : i32
    return %arg0, %c0_i32, %c0_i32_0 : i32, i32, i32
  }
  func.func @transform_3(%arg0: i32) -> (i32, i32, i32, i32) {
    %c0_i32 = arith.constant 0 : i32
    %c0_i32_0 = arith.constant 0 : i32
    %c0_i32_1 = arith.constant 0 : i32
    %c0_i32_2 = arith.constant 0 : i32
    return %arg0, %c0_i32, %c0_i32_0, %c0_i32_1 : i32, i32, i32, i32
  }
  func.func @transform_4(%arg0: i32) -> (i32, i32, i32) {
    %c0_i32 = arith.constant 0 : i32
    %c0_i32_0 = arith.constant 0 : i32
    %c0_i32_1 = arith.constant 0 : i32
    return %arg0, %c0_i32, %c0_i32_0 : i32, i32, i32
  }
  func.func @transform_5(%arg0: i32) -> (i32, i32, i32) {
    %c0_i32 = arith.constant 0 : i32
    %c0_i32_0 = arith.constant 0 : i32
    %c0_i32_1 = arith.constant 0 : i32
    return %arg0, %c0_i32, %c0_i32_0 : i32, i32, i32
  }
  func.func @transform_6(%arg0: i32) -> (i32, i32, i32) {
    %c0_i32 = arith.constant 0 : i32
    %c0_i32_0 = arith.constant 0 : i32
    %c0_i32_1 = arith.constant 0 : i32
    return %arg0, %c0_i32, %c0_i32_0 : i32, i32, i32
  }
  func.func @transform_7(%arg0: i32) -> (i32, i32, i32) {
    %c0_i32 = arith.constant 0 : i32
    %c0_i32_0 = arith.constant 0 : i32
    %c0_i32_1 = arith.constant 0 : i32
    return %arg0, %c0_i32, %c0_i32_0 : i32, i32, i32
  }
  func.func @transform_8(%arg0: i32) -> (i32, i32, i32) {
    %c0_i32 = arith.constant 0 : i32
    %c0_i32_0 = arith.constant 0 : i32
    %c0_i32_1 = arith.constant 0 : i32
    return %arg0, %c0_i32, %c0_i32_0 : i32, i32, i32
  }
  func.func @transform_9(%arg0: i32) -> (i32, i32, i32) {
    %c0_i32 = arith.constant 0 : i32
    %c0_i32_0 = arith.constant 0 : i32
    %c0_i32_1 = arith.constant 0 : i32
    return %arg0, %c0_i32, %c0_i32_0 : i32, i32, i32
  }
  func.func @transform_10(%arg0: i32) -> (i32, i32, i32) {
    %c0_i32 = arith.constant 0 : i32
    %c0_i32_0 = arith.constant 0 : i32
    %c0_i32_1 = arith.constant 0 : i32
    return %arg0, %c0_i32, %c0_i32_0 : i32, i32, i32
  }
  func.func @transform_11(%arg0: i32) -> (i32, i32, i32) {
    %c0_i32 = arith.constant 0 : i32
    %c0_i32_0 = arith.constant 0 : i32
    %c0_i32_1 = arith.constant 0 : i32
    return %arg0, %c0_i32, %c0_i32_0 : i32, i32, i32
  }
  func.func @transform_12(%arg0: i32) -> (i32, i32, i32) {
    %c0_i32 = arith.constant 0 : i32
    %c0_i32_0 = arith.constant 0 : i32
    %c0_i32_1 = arith.constant 0 : i32
    return %arg0, %c0_i32, %c0_i32_0 : i32, i32, i32
  }
  func.func @transform_13(%arg0: i32) -> (i32, i32) {
    %c0_i32 = arith.constant 0 : i32
    %c0_i32_0 = arith.constant 0 : i32
    %c0_i32_1 = arith.constant 0 : i32
    return %c0_i32, %c0_i32_0 : i32, i32
  }
}

</mosaic_0001>

<bundles_post_ra>
// kernel: _lambda_.1
= control target key start
LH: loop header
LB: loop body
LE: loop exit
PB: predicated region body
PF: predicated region fallthrough
CT: control target
= control target key end

     0   :  { %s5340_s0 = inlined_call_operand.vmem [shape: f32[16,32], index: 0, kind: input, shape index: {}]   ;;  %s5341_s1 = inlined_call_operand.hbm [shape: bf16[2,32,96], index: 1, kind: input, shape index: {}]   ;;  %s5342_s2 = inlined_call_operand.vmem [shape: f32[2,1,96], index: 2, kind: input, shape index: {}]   ;;  %s5343_s3 = inlined_call_operand.hbm [shape: bf16[2,4,8,32], index: 3, kind: input, shape index: {}]   ;;  %s5344_s4 = inlined_call_operand.vmem [shape: f32[2,1,32], index: 4, kind: input, shape index: {}]   ;;  %s5345_s5 = inlined_call_operand.vmem [shape: f32[2,1,32], index: 5, kind: input, shape index: {}, may-alias: {5,11}]   ;;  %s5346_s6 = inlined_call_operand.vmem [shape: f32[2,1,32], index: 6, kind: input, shape index: {}, may-alias: {6,12}]   ;;  %s5347_s7 = inlined_call_operand.hbm [shape: bf16[2,32,2048], index: 7, kind: input, shape index: {}]   ;;  %s5348_s8 = inlined_call_operand.vmem [shape: f32[2,1,2048], index: 8, kind: input, shape index: {}]   ;;  %s5349_s9 = inlined_call_operand.hbm [shape: bf16[2,2048,32], index: 9, kind: input, shape index: {}]   ;;  %s5350_s10 = inlined_call_operand.vmem [shape: f32[2,1,32], index: 10, kind: input, shape index: {}]   ;;  %s5351_s11 = inlined_call_operand.vmem [shape: f32[2,1,32], index: 11, kind: input, shape index: {}, may-alias: {5,11}]   ;;  %s5352_s12 = inlined_call_operand.vmem [shape: f32[2,1,32], index: 12, kind: input, shape index: {}, may-alias: {6,12}]   ;;  %s5353_s13 = inlined_call_operand.vmem [shape: f32[16,32], index: 13, kind: output, shape index: {}]  }
   0x1   :  { %5364 = sst [smem:[#allocation16_spill]] %s5340_s0 }
   0x2   :  { %5365 = sst [smem:[#allocation17_spill]] %s5341_s1 }
   0x3   :  { %5366 = sst [smem:[#allocation18_spill]] %s5342_s2 }
   0x4   :  { %5367 = sst [smem:[#allocation19_spill]] %s5343_s3 }
   0x5   :  { %5368 = sst [smem:[#allocation20_spill]] %s5347_s7 }
   0x6   :  { %5369 = sst [smem:[#allocation21_spill]] %s5349_s9 }
   0x7   :  { %5370 = sst [smem:[#allocation22_spill]] %s5351_s11 }
   0x8   :  { %5371 = sst [smem:[#allocation23_spill]] %s5352_s12 }
   0x9   :  { %5372 = sst [smem:[#allocation24_spill]] %s5353_s13 }
   0xa   :  { %18 = vsyncpa [#allocation4], 0 }
   0xb   :  { %20 = vsyncpa [#allocation4 + $0x1], 0 }
   0xc   :  { %21 = vsyncpa [#allocation6], 0 }
   0xd   :  { %23 = vsyncpa [#allocation6 + $0x1], 0 }
   0xe   :  { %24 = vsyncpa [#allocation9], 0 }
   0xf   :  { %26 = vsyncpa [#allocation9 + $0x1], 0  ;;  %s4656_s25 = smov 0   ;;  %s4658_s26 = smov 0  }
  0x10   :  { %s4660_s27 = smov 0   ;;  %s4662_s28 = smov 0  }
  0x11 LB: > { %5373 = sst [smem:[#allocation13_spill]] %s4571_s27  ;;  %s4675_s29 = sadd.s32 4294967295, %s4575_s28   ;;  %s4575_s28 = sphi %s4662_s28, %s5396_s28   ;;  %s4571_s27 = sphi %s4660_s27, %s5398_s27   ;;  %s4567_s26 = sphi %s4658_s26, %s5400_s26   ;;  %s4563_s25 = sphi %s4656_s25, %s5399_s25  }
  0x12   : > { %s4678_s30 = sadd.s32 1, %s4575_s28   ;;  %s60_s15 = sadd.s32 1, %s4571_s27 }
  0x13   : > { %5374 = sst [smem:[#allocation14_spill]] %s4678_s30  ;;  %s57_s14 = ssub.s32 %s4575_s28, %s4678_s30 }
  0x14   : > { %p58_p0 = scmp.eq.s32.totalorder %s57_s14, 0  ;;  %p67_p1 = scmp.ne.s32.totalorder %s4571_s27, %s4567_s26 }
  0x15   : > { %p68_p2 = scmp.eq.s32.totalorder %s4575_s28, 0  ;;  %p73_p3 = scmp.ne.s32.totalorder %s4567_s26, %s4563_s25 }
  0x16   : > { %s4688_s16 = scalar_select %p58_p0, %s4571_s27, %s60_s15  }
  0x17   : > { %p69_p4 = por %p68_p2, %p67_p1  ;;  %p74_p5 = scmp.eq.s32.totalorder %s4675_s29, 0 }
  0x18   : > { %5375 = sst [smem:[#allocation15_spill]] %s4688_s16  ;;  %p4322_p6 = scmp.lt.s32.totalorder %s4575_s28, 2 }
  0x19   : > { %p4692_p7 = por %p74_p5, %p73_p3  ;;  %s4697_s18 = sand.u32 1, %s4571_s27  }
  0x1a   : > { %s5358_s19 = sshll.u32 %s4697_s18, 4  ;;  %s5359_s20 = sshll.u32 %s4575_s28, 4 }
  0x1b   : > { %p4701_p8 = pnand %p4322_p6, %p69_p4  ;;  %s435_s22 = sand.u32 1, %s4575_s28  }
  0x1c   : > { %s5378_s3 = sld [smem:[#allocation19_spill]]  ;;  %s439_s15 = scalar_lea.vmem [#allocation5], %s5358_s19 }
  0x1d   : > { %s447_s16 = sshll.u32 %s439_s15, 4  ;;  %s4713_s27 = scalar_lea.sflag [#allocation6], %s435_s22  ;;  %s448_s16 = int_to_ptr.vmem [resolvable:$true] %s447_s16 }
  0x1e   : > { %p4417_p10 = pneg %p4701_p8 }
  0x22   : > { %s444_s25 = scalar_lea.hbm %s5378_s3, %s5359_s20 }
  0x23   : > { %s445_s14 = sshll.u32 %s444_s25, 4  ;;  %s4420_s25 = scalar_lea.hbm %s5378_s3, 32  ;;  %s446_s14 = int_to_ptr.hbm [resolvable:$true] %s445_s14 }
  0x24   : > { %s4413_s30 = sshra.s32 %s446_s14, 4  ;;  %s4414_s30 = int_to_ptr.hbm [resolvable:$true] %s4413_s30 }
  0x25   : > { %s4415_s13 = scalar_lea.hbm %s4414_s30, 16  ;;  %p4421_p13 = scmp.lt.s32.totalorder %s4414_s30, %s5378_s3 }
  0x26   : > { %p4416_p9 = scmp.ne.s32.totalorder %s4414_s30, %s4415_s13  ;;  %p4422_p0 = scmp.lt.s32.totalorder %s4420_s25, %s4415_s13 }
  0x28   : > { %p4418_p11 = pnand %p4417_p10, %p4416_p9  ;;  %p4423_p1 = por %p4422_p0, %p4421_p13 }
  0x2a   : > { %p4419_p12 = pneg %p4418_p11 }
  0x2c   : > { %p4424_p2 = pnand %p4423_p1, %p4419_p12 }
  0x2e   : > { %4427 = shalt.err (!%p4424_p2)
}
  0x2f   : > { %s5361_s22 = smov 64   ;;  %s5363_s20 = smov 4  }
  0x30   : > { %4315 = dma.hbm_to_vmem [thread:$0]  (!%p4701_p8), %s446_s14, 256, %s448_s16, %s4713_s27, %s5361_s22, %s5361_s22, %s5363_s20  }
  0x31   : > { %p3441_p3 = scmp.ge.s32.totalorder %s4575_s28, 1  ;;  %p542_p4 = scmp.lt.s32.totalorder %s4575_s28, 3 }
  0x32   : > { %s5380_s30 = sshll.u32 %s4575_s28, 4  ;;  %s5381_s1 = sld [smem:[#allocation17_spill]] }
  0x33   : > { %p4734_p5 = pnand %p3441_p3, %p542_p4  ;;  %s5382_s15 = sshll.u32 %s4697_s18, 4 }
  0x34   : > { %s411_s3 = scalar_lea.vmem [#allocation3], %s5382_s15  ;;  %s408_s12 = scalar_lea.sflag [#allocation4], %s4697_s18 }
  0x35   : > { %s419_s0 = sshll.u32 %s411_s3, 4  ;;  %s420_s0 = int_to_ptr.vmem [resolvable:$true] %s419_s0 }
  0x38   : > { %s416_s24 = scalar_lea.hbm %s5381_s1, %s5380_s30  ;;  %s4450_s19 = scalar_lea.hbm %s5381_s1, 32 }
  0x39   : > { %s417_s25 = sshll.u32 %s416_s24, 4  ;;  %s418_s25 = int_to_ptr.hbm [resolvable:$true] %s417_s25 }
  0x3a   : > { %s4443_s11 = sshra.s32 %s418_s25, 4  ;;  %s4444_s11 = int_to_ptr.hbm [resolvable:$true] %s4443_s11 }
  0x3b   : > { %s4445_s16 = scalar_lea.hbm %s4444_s11, 16  ;;  %p4451_p12 = scmp.lt.s32.totalorder %s4444_s11, %s5381_s1 }
  0x3c   : > { %p4446_p6 = scmp.ne.s32.totalorder %s4444_s11, %s4445_s16  ;;  %p4452_p13 = scmp.lt.s32.totalorder %s4450_s19, %s4445_s16 }
  0x3e   : > { %p4448_p9 = pnand %p4446_p6, %p4417_p10  ;;  %p4453_p0 = por %p4452_p13, %p4451_p12 }
  0x40   : > { %p4449_p11 = pneg %p4448_p9 }
  0x42   : > { %p4454_p1 = pnand %p4453_p0, %p4449_p11 }
  0x44   : > { %4457 = shalt.err (!%p4454_p1)
}
  0x45   : > { %s5383_s3 = smov 64   ;;  %s3435_s24 = sshll.u32 %s4697_s18, 8 }
  0x46   : > { %4312 = dma.hbm_to_vmem [thread:$0]  (!%p4701_p8), %s418_s25, 256, %s420_s0, %s408_s12, %s5383_s3, %s5383_s3, %s5363_s20  }
  0x47   : > { %s4137_s22 = sshll.u32 %s4575_s28, 8  ;;  %s5384_s7 = sld [smem:[#allocation20_spill]] }
  0x48   : > { %s479_s16 = scalar_lea.vmem [#allocation7], %s3435_s24 }
  0x49   : > { %s487_s19 = sshll.u32 %s479_s16, 4  ;;  %s488_s19 = int_to_ptr.vmem [resolvable:$true] %s487_s19 }
  0x4d   : > { %s484_s30 = scalar_lea.hbm %s5384_s7, %s4137_s22  ;;  %s4480_s25 = scalar_lea.hbm %s5384_s7, 512 }
  0x4e   : > { %s485_s11 = sshll.u32 %s484_s30, 4  ;;  %s486_s11 = int_to_ptr.hbm [resolvable:$true] %s485_s11 }
  0x4f   : > { %s4473_s23 = sshra.s32 %s486_s11, 4  ;;  %s4474_s23 = int_to_ptr.hbm [resolvable:$true] %s4473_s23 }
  0x50   : > { %s4475_s1 = scalar_lea.hbm %s4474_s23, 256  ;;  %p4481_p6 = scmp.lt.s32.totalorder %s4474_s23, %s5384_s7 }
  0x51   : > { %p4476_p2 = scmp.ne.s32.totalorder %s4474_s23, %s4475_s1  ;;  %p4482_p9 = scmp.lt.s32.totalorder %s4480_s25, %s4475_s1 }
  0x53   : > { %p4478_p3 = pnand %p4476_p2, %p4417_p10  ;;  %p4483_p11 = por %p4482_p9, %p4481_p6 }
  0x55   : > { %p4479_p4 = pneg %p4478_p3 }
  0x57   : > { %p4484_p12 = pnand %p4483_p11, %p4479_p4 }
  0x59   : > { %4487 = shalt.err (!%p4484_p12)
}
  0x5a   : > { %s4579_s24 = smov 1024   ;;  %s3438_s22 = sshll.u32 %s4697_s18, 10 }
  0x5b   : > { %4318 = dma.hbm_to_vmem [thread:$0]  (!%p4701_p8), %s486_s11, 4096, %s488_s19, %s4713_s27, %s4579_s24, %s4579_s24, %s5383_s3  }
  0x5c   : > { %s4138_s14 = sshll.u32 %s4575_s28, 10  ;;  %s5385_s9 = sld [smem:[#allocation21_spill]] }
  0x5d   : > { %s508_s23 = scalar_lea.vmem [#allocation8], %s3438_s22  ;;  %s505_s12 = scalar_lea.sflag [#allocation9], %s4697_s18 }
  0x5e   : > { %s516_s0 = sshll.u32 %s508_s23, 4  ;;  %s517_s0 = int_to_ptr.vmem [resolvable:$true] %s516_s0 }
  0x62   : > { %s513_s20 = scalar_lea.hbm %s5385_s9, %s4138_s14  ;;  %s4510_s11 = scalar_lea.hbm %s5385_s9, 2048 }
  0x63   : > { %s514_s1 = sshll.u32 %s513_s20, 4  ;;  %s515_s1 = int_to_ptr.hbm [resolvable:$true] %s514_s1 }
  0x64   : > { %s4503_s25 = sshra.s32 %s515_s1, 4  ;;  %s4504_s25 = int_to_ptr.hbm [resolvable:$true] %s4503_s25 }
  0x65   : > { %s4505_s15 = scalar_lea.hbm %s4504_s25, 1024  ;;  %p4511_p2 = scmp.lt.s32.totalorder %s4504_s25, %s5385_s9 }
  0x66   : > { %p4506_p13 = scmp.ne.s32.totalorder %s4504_s25, %s4505_s15  ;;  %p4512_p3 = scmp.lt.s32.totalorder %s4510_s11, %s4505_s15 }
  0x68   : > { %p4508_p0 = pnand %p4506_p13, %p4417_p10  ;;  %p4513_p4 = por %p4512_p3, %p4511_p2 }
  0x6a   : > { %p4509_p1 = pneg %p4508_p0 }
  0x6c   : > { %p4514_p6 = pnand %p4513_p4, %p4509_p1 }
  0x6e   : > { %4517 = shalt.err (!%p4514_p6)
}
  0x6f   : > { %s5386_s18 = smov 4   ;;  %546 = sbr.rel (%p4734_p5) target bundleno = 2159 (0x86f), region = 72 }
  0x70   : > { %4321 = dma.hbm_to_vmem [thread:$0]  (!%p4701_p8), %s515_s1, 16384, %s517_s0, %s505_s12, %s5383_s3, %s5383_s3, %s5386_s18  }
  0x71   : > { %s548_s22 = sand.u32 (!%p4734_p5), 1, %s4567_s26  }
  0x72   : > { %s3442_s14 = sshll.u32 (!%p4734_p5), %s548_s22, 4  ;;  %s549_s30 = scalar_lea.sflag (!%p4734_p5), [#allocation4], %s548_s22 }
  0x73   : > { %s4801_s16 = scalar_lea.vmem (!%p4734_p5), [#allocation3], %s3442_s14 }
  0x74   : > { %4550 = dma.done.wait (%p4692_p7), %s549_s30, 256  }
  0x75   : > { %4552 = vsyncadd (%p4692_p7), %s549_s30, 4294967040  ;;  %s558_s21 = sand.u32 1, %s4675_s29   ;;  %s4808_s3 = scalar_lea.vmem [#allocation5], %s3442_s14 }
  0x76   : > { %s559_s20 = scalar_lea.sflag [#allocation6], %s558_s21 }
  0x77   : > { %4554 = dma.done.wait (%p4692_p7), %s559_s20, 4352  }
  0x78   : > { %4556 = vsyncadd (%p4692_p7), %s559_s20, 4294962944  ;;  %s3444_s13 = sshll.u32 %s548_s22, 8  ;;  %s3445_s1 = sshll.u32 %s548_s22, 10 }
  0x79   : > { %s4814_s23 = scalar_lea.vmem [#allocation7], %s3444_s13  ;;  %s579_s0 = scalar_lea.sflag [#allocation9], %s548_s22 }
  0x7a   : > { %s4816_s12 = scalar_lea.vmem [#allocation8], %s3445_s1 }
  0x7b   : > { %4558 = dma.done.wait (%p4692_p7), %s579_s0, 16384  }
  0x7c   : > { %4560 = vsyncadd (%p4692_p7), %s579_s0, 4294950912  ;;  %p661_p8 = scmp.lt.s32.totalorder %s4675_s29, 1  ;;  %s5387_s2 = sld [smem:[#allocation18_spill]] }
  0x7d   : > { %s5388_s19 = sld [smem:[#allocation22_spill]]  ;;  %p3447_p7 = scmp.ne.s32.totalorder %s4675_s29, 0 }
  0x7e   : > { %s4824_s25 = scalar_select %p661_p8, %s4675_s29, 1 }
  0x7f   : > { %s5389_s22 = sld [smem:[#allocation23_spill]] }
  0x80   : > { %s672_s21 = scalar_lea.vmem %s5346_s6, %s4824_s25  ;;  %s3446_s20 = sshll.u32 %s4824_s25, 4 }
  0x81   : > { %s679_s0 = scalar_lea.vmem %s5350_s10, %s4824_s25  ;;  %690 = sbr.rel (%p3447_p7) target bundleno = 140 (0x8c), region = 92 }
  0x82   : > { %s663_s28 = scalar_lea.vmem %s5387_s2, %s4824_s25  ;;  %s4850_s2 = scalar_lea.vmem %s5348_s8, %s3446_s20 }
  0x83   : > { %s682_s7 = scalar_lea.vmem %s5388_s19, %s4824_s25  ;;  %s5390_s13 = sld [smem:[#allocation16_spill]] (!%p3447_p7) }
  0x85   : > { %s685_s9 = scalar_lea.vmem %s5389_s22, %s4824_s25 }
  0x86   : > { %vm693_vm0 = vcmask 261120  }
  0x89   : > { %v691_v0 = vld [vmem:[%s5390_s13] sm:$0xff]  ;;  %v692_v1 = vld [vmem:[%s5390_s13 + $0x8] sm:$0xff] }
  0x8a   : > { %694 = vst.msk [vmem:[#allocation2] sm:$0xff] %vm693_vm0, %v691_v0 }
  0x8b   : > { %695 = vst.msk [vmem:[#allocation2 + $0x8] sm:$0xff] %vm693_vm0, %v692_v1 }
  0x8c PF: > { %v4140_v2 = vld [vmem:[%s4801_s16 + $0x8] sm:$0xff]  ;;  %v4139_v3 = vld [vmem:[%s4801_s16] sm:$0xff]  ;;  %vm719_vm1 = vcmask 261120   ;;  %s4580_s29 = smov 112   ;;  %s4581_s19 = smov 120   ;;  %vm770_vm2 = vcmask 64512  }
  0x8d   : > { %729 = vmatpush.bf16.msra.mxu0 %v4140_v2  ;;  %v4364_v7 = vld [vmem:[%s663_s28] ss:$0 sm:$0xff]  ;;  %s4582_s16 = smov 104   ;;  %s4583_s28 = smov 96   ;;  %vm1067_vm3 = vcmask 1043456  }
  0x8e   : > { %s4584_s22 = smov 64   ;;  %s5391_s27 = scalar_lea.vmem %s5344_s4, %s4824_s25 }
  0x8f   : > { %s5392_s24 = scalar_lea.vmem %s5345_s5, %s4824_s25 }
  0x91   : > { %v4869_v4 = vld [vmem:[#allocation2] sm:$0xff]  ;;  %730 = vmatpush.bf16.msra.mxu0 %v4139_v3 }
  0x92   : > { %v4871_v5 = vld [vmem:[#allocation2 + $0x8] sm:$0xff] }
  0x93   : > { %v698_v6 = vpack.c.bf16 %v4871_v5, %v4869_v4 }
  0x95   : > { %3456 = vmatmul.msk.bf16.vlgmr.msra.gmra.mxu0 %vm719_vm1, %v698_v6 }
 0x112   : > { %v732_v8 = vpop.f32.mrf.mxu0 }
 0x113   : > { %v733_v9 = vadd.f32 %v4364_v7, %v732_v8 }
 0x115   : > { %745 = vrot.lane.b32.xlu2 %v733_v9, %s4580_s29  ;;  %739 = vrot.lane.b32.xlu0 %v733_v9, %s4581_s19  ;;  %v757_v12 = vpack.c.bf16 %v733_v9, %v733_v9 }
 0x117   : > { %v766_v14 = vunpack.c.l.b16 %v757_v12 }
 0x119   : > { %v4876_v16 = vpack.c.b16 %v766_v14, %v766_v14 }
 0x11a   : > { %v734_v10 = vpop.f32.mrf.mxu0 }
 0x11b   : > { %v735_v11 = vadd.f32 %v4364_v7, %v734_v10 }
 0x11d   : > { %741 = vrot.lane.b32.xlu1 %v735_v11, %s4581_s19  ;;  %753 = vrot.lane.b32.xlu2 %v735_v11, %s4582_s16  ;;  %v758_v13 = vpack.c.bf16 %v735_v11, %v735_v11  ;;  %s5395_s19 = sld [smem:[#allocation24_spill]] }
 0x11e   : > { %747 = vrot.lane.b32.xlu0 %v735_v11, %s4580_s29 }
 0x11f   : > { %v791_v15 = vunpack.c.l.b16 %v758_v13 }
 0x121   : > { %v4878_v17 = vpack.c.b16 %v791_v15, %v791_v15 }
 0x125   : > { %751 = vrot.lane.b32.xlu1 %v733_v9, %s4582_s16  ;;  %768 = vrot.lane.b32.xlu2 %v4876_v16, %s4583_s28 }
 0x126   : > { %793 = vrot.lane.b32.xlu0 %v4878_v17, %s4583_s28 }
 0x16f   : > { %v746_v18 = vpop.permute.xlu2 %745 }
 0x170   : > { %v761_v34 = vpack.c.bf16 %v746_v18, %v746_v18 }
 0x172   : > { %v863_v40 = vunpack.c.l.b16 %v761_v34 }
 0x174   : > { %v4900_v45 = vpack.c.b16 %v863_v40, %v863_v40 }
 0x177   : > { %v754_v19 = vpop.permute.xlu2 %753 }
 0x178   : > { %v764_v32 = vpack.c.bf16 %v754_v19, %v754_v19 }
 0x17a   : > { %v935_v37 = vunpack.c.l.b16 %v764_v32 }
 0x17c   : > { %v4896_v43 = vpack.c.b16 %v935_v37, %v935_v37 }
 0x17f   : > { %v769_v20 = vpop.permute.xlu2 %768 }
 0x180   : > { %v775_v21 = vsel %vm770_vm2, %v769_v20, 0 }
 0x181   : > { %784 = vmatpush.bf16.xpose.msra.mxu1 %v775_v21 }
 0x187   : > { %v740_v22 = vpop.permute.xlu0 %739 }
 0x188   : > { %v759_v23 = vpack.c.bf16 %v740_v22, %v740_v22  ;;  %3457 = vmatmul.msk.bf16.vlgmr.msra.gmra.mxu1 %vm770_vm2, %v757_v12 }
 0x18a   : > { %v815_v24 = vunpack.c.l.b16 %v759_v23 }
 0x18c   : > { %v816_v25 = vpack.c.b16 %v815_v24, %v815_v24 }
 0x18e   : > { %817 = vrot.lane.b32.xlu1 %v816_v25, %s4583_s28 }
 0x18f   : > { %v742_v26 = vpop.permute.xlu1 %741 }
 0x190   : > { %v760_v27 = vpack.c.bf16 %v742_v26, %v742_v26  ;;  %v748_v28 = vpop.permute.xlu0 %747 }
 0x191   : > { %v762_v29 = vpack.c.bf16 %v748_v28, %v748_v28 }
 0x192   : > { %v839_v30 = vunpack.c.l.b16 %v760_v27 }
 0x193   : > { %v887_v31 = vunpack.c.l.b16 %v762_v29 }
 0x194   : > { %v4887_v33 = vpack.c.b16 %v839_v30, %v839_v30 }
 0x195   : > { %v4889_v35 = vpack.c.b16 %v887_v31, %v887_v31 }
 0x196   : > { %841 = vrot.lane.b32.xlu1 %v4887_v33, %s4583_s28 }
 0x197   : > { %889 = vrot.lane.b32.xlu0 %v4889_v35, %s4583_s28  ;;  %v752_v36 = vpop.permute.xlu1 %751 }
 0x198   : > { %v763_v38 = vpack.c.bf16 %v752_v36, %v752_v36  ;;  %v794_v39 = vpop.permute.xlu0 %793 }
 0x199   : > { %v799_v41 = vsel %vm770_vm2, %v794_v39, 0 }
 0x19a   : > { %v911_v42 = vunpack.c.l.b16 %v763_v38  ;;  %808 = vmatpush.bf16.xpose.msra.mxu2 %v799_v41 }
 0x19c   : > { %v4898_v44 = vpack.c.b16 %v911_v42, %v911_v42 }
 0x19e   : > { %937 = vrot.lane.b32.xlu1 %v4896_v43, %s4583_s28  ;;  %913 = vrot.lane.b32.xlu2 %v4898_v44, %s4583_s28 }
 0x19f   : > { %865 = vrot.lane.b32.xlu0 %v4900_v45, %s4583_s28 }
 0x1a1   : > { %3458 = vmatmul.msk.bf16.vlgmr.msra.gmra.mxu2 %vm770_vm2, %v758_v13 }
 0x1a6   : > { %1105 = vrot.lane.b32.xlu1 %v816_v25, %s4584_s22 }
 0x1f8   : > { %v914_v46 = vpop.permute.xlu2 %913 }
 0x1f9   : > { %v919_v49 = vsel %vm770_vm2, %v914_v46, 0 }
 0x200   : > { %v818_v47 = vpop.permute.xlu1 %817 }
 0x201   : > { %v823_v48 = vsel %vm770_vm2, %v818_v47, 0 }
 0x202   : > { %832 = vmatpush.bf16.xpose.msra.mxu3 %v823_v48 }
 0x205   : > { %v786_v50 = vpop.f32.mrf.mxu1 }
 0x206   : > { %v958_v51 = vmul.f32 0.35355338, %v786_v50 }
 0x208   : > { %v842_v52 = vpop.permute.xlu1 %841  ;;  %v966_v53 = vsel %vm770_vm2, %v958_v51, -inf }
 0x209   : > { %v890_v54 = vpop.permute.xlu0 %889  ;;  %3459 = vmatmul.msk.bf16.vlgmr.msra.gmra.mxu3 %vm770_vm2, %v759_v23  ;;  %967 = vmax.xlane.f32.xlu0 %v966_v53  ;;  %v847_v55 = vsel %vm770_vm2, %v842_v52, 0 }
 0x20a   : > { %928 = vmatpush.bf16.xpose.msrb.mxu3 %v919_v49  ;;  %856 = vmatpush.bf16.xpose.msrb.mxu0 %v847_v55  ;;  %v895_v56 = vsel %vm770_vm2, %v890_v54, 0 }
 0x20b   : > { %904 = vmatpush.bf16.xpose.msrb.mxu2 %v895_v56 }
 0x20d   : > { %v788_v57 = vpop.f32.mrf.mxu1 }
 0x210   : > { %v938_v58 = vpop.permute.xlu1 %937 }
 0x211   : > { %v943_v59 = vsel %vm770_vm2, %v938_v58, 0  ;;  %v866_v60 = vpop.permute.xlu0 %865  ;;  %3460 = vmatmul.msk.bf16.vlgmr.msrb.gmra.mxu0 %vm770_vm2, %v760_v27 }
 0x212   : > { %3462 = vmatmul.msk.bf16.vlgmr.msrb.gmra.mxu2 %vm770_vm2, %v762_v29  ;;  %v871_v61 = vsel %vm770_vm2, %v866_v60, 0  ;;  %952 = vmatpush.bf16.xpose.msra.mxu0 %v943_v59 }
 0x213   : > { %880 = vmatpush.bf16.xpose.msrb.mxu1 %v871_v61 }
 0x218   : > { %v1106_v62 = vpop.permute.xlu1 %1105 }
 0x219   : > { %v1111_v63 = vsel %vm1067_vm3, %v1106_v62, 0  ;;  %3463 = vmatmul.msk.bf16.vlgmr.msrb.gmra.mxu3 %vm770_vm2, %v763_v38 }
 0x21a   : > { %3461 = vmatmul.msk.bf16.vlgmr.msrb.gmra.mxu1 %vm770_vm2, %v761_v34  ;;  %1120 = vmatpush.bf16.msra.mxu3 %v1111_v63 }
 0x221   : > { %3464 = vmatmul.msk.bf16.vlgmr.msra.gmra.mxu0 %vm770_vm2, %v764_v32 }
 0x224   : > { %v810_v0 = vpop.f32.mrf.mxu2 }
 0x225   : > { %v959_v1 = vmul.f32 0.35355338, %v810_v0 }
 0x227   : > { %v969_v2 = vsel %vm770_vm2, %v959_v1, -inf }
 0x228   : > { %970 = vmax.xlane.f32.xlu2 %v969_v2 }
 0x22c   : > { %v812_v3 = vpop.f32.mrf.mxu2 }
 0x240   : > { %1062 = vrot.lane.b32.xlu2 %v4876_v16, %s4584_s22 }
 0x27c   : > { %v968_v6 = vpop.xlane.xlu0 %967 }
 0x27d   : > { %v990_v7 = vsub.f32 %v958_v51, %v968_v6 }
 0x27f   : > { %v998_v8 = vmul.f32 1.442695, %v990_v7 }
 0x281   : > { %4371 = vpow2.f32 %v998_v8 }
 0x287   : > { %v4372_v15 = vpop.eup %4371 }
 0x288   : > { %v1014_v22 = vsel %vm770_vm2, %v4372_v15, 0.0 }
 0x28c   : > { %v834_v9 = vpop.f32.mrf.mxu3 }
 0x28d   : > { %v960_v10 = vmul.f32 0.35355338, %v834_v9 }
 0x28e   : > { %v858_v11 = vpop.f32.mrf.mxu0 }
 0x28f   : > { %v961_v12 = vmul.f32 0.35355338, %v858_v11  ;;  %v972_v13 = vsel %vm770_vm2, %v960_v10, -inf }
 0x290   : > { %973 = vmax.xlane.f32.xlu1 %v972_v13 }
 0x291   : > { %v975_v14 = vsel %vm770_vm2, %v961_v12, -inf }
 0x292   : > { %976 = vmax.xlane.f32.xlu2 %v975_v14 }
 0x294   : > { %v836_v18 = vpop.f32.mrf.mxu3 }
 0x295   : > { %v906_v19 = vpop.f32.mrf.mxu2 }
 0x296   : > { %v963_v20 = vmul.f32 0.35355338, %v906_v19  ;;  %v860_v21 = vpop.f32.mrf.mxu0 }
 0x297   : > { %v882_v16 = vpop.f32.mrf.mxu1 }
 0x298   : > { %v962_v23 = vmul.f32 0.35355338, %v882_v16  ;;  %1015 = vadd.xlane.f32.xlu1 %v1014_v22  ;;  %v981_v24 = vsel %vm770_vm2, %v963_v20, -inf }
 0x29a   : > { %982 = vmax.xlane.f32.xlu2 %v981_v24  ;;  %v978_v25 = vsel %vm770_vm2, %v962_v23, -inf }
 0x29b   : > { %979 = vmax.xlane.f32.xlu0 %v978_v25  ;;  %v971_v26 = vpop.xlane.xlu2 %970 }
 0x29c   : > { %v930_v27 = vpop.f32.mrf.mxu3  ;;  %v991_v39 = vsub.f32 %v959_v1, %v971_v26 }
 0x29d   : > { %v908_v28 = vpop.f32.mrf.mxu2  ;;  %v964_v29 = vmul.f32 0.35355338, %v930_v27 }
 0x29e   : > { %v954_v30 = vpop.f32.mrf.mxu0  ;;  %v1000_v40 = vmul.f32 1.442695, %v991_v39 }
 0x29f   : > { %v884_v31 = vpop.f32.mrf.mxu1  ;;  %v984_v32 = vsel %vm770_vm2, %v964_v29, -inf  ;;  %v965_v42 = vmul.f32 0.35355338, %v954_v30 }
 0x2a0   : > { %985 = vmax.xlane.f32.xlu1 %v984_v32  ;;  %4373 = vpow2.f32 %v1000_v40 }
 0x2a1   : > { %v987_v47 = vsel %vm770_vm2, %v965_v42, -inf }
 0x2a3   : > { %v1063_v34 = vpop.permute.xlu2 %1062 }
 0x2a4   : > { %v1069_v36 = vsel %vm1067_vm3, %v1063_v34, 0  ;;  %v932_v37 = vpop.f32.mrf.mxu3 }
 0x2a5   : > { %1078 = vmatpush.bf16.msra.mxu1 %v1069_v36 }
 0x2a6   : > { %v956_v38 = vpop.f32.mrf.mxu0  ;;  %v4938_v41 = vpop.eup %4373 }
 0x2a7   : > { %v1017_v46 = vsel %vm770_vm2, %v4938_v41, 0.0 }
 0x2af   : > { %1084 = vrot.lane.b32.xlu0 %v4878_v17, %s4584_s22 }
 0x2b2   : > { %1126 = vrot.lane.b32.xlu2 %v4887_v33, %s4584_s22 }
 0x2d9   : > { %1018 = vadd.xlane.f32.xlu0 %v1017_v46 }
 0x2db   : > { %988 = vmax.xlane.f32.xlu2 %v987_v47 }
 0x303   : > { %v974_v48 = vpop.xlane.xlu1 %973 }
 0x304   : > { %v992_v49 = vsub.f32 %v960_v10, %v974_v48 }
 0x305   : > { %v977_v50 = vpop.xlane.xlu2 %976 }
 0x306   : > { %v1002_v17 = vmul.f32 1.442695, %v992_v49  ;;  %v993_v51 = vsub.f32 %v961_v12, %v977_v50 }
 0x308   : > { %4375 = vpow2.f32 %v1002_v17  ;;  %v1004_v33 = vmul.f32 1.442695, %v993_v51 }
 0x30a   : > { %4377 = vpow2.f32 %v1004_v33 }
 0x30b   : > { %v1016_v52 = vpop.xlane.xlu1 %1015 }
 0x30c   : > { %4379 = vrcp.f32 %v1016_v52 }
 0x30d   : > { %v983_v53 = vpop.xlane.xlu2 %982 }
 0x30e   : > { %v4376_v54 = vpop.eup %4375  ;;  %v980_v55 = vpop.xlane.xlu0 %979  ;;  %v995_v56 = vsub.f32 %v963_v20, %v983_v53 }
 0x30f   : > { %v994_v57 = vsub.f32 %v962_v23, %v980_v55  ;;  %v1020_v58 = vsel %vm770_vm2, %v4376_v54, 0.0 }
 0x310   : > { %v4378_v59 = vpop.eup %4377  ;;  %v1008_v60 = vmul.f32 1.442695, %v995_v56  ;;  %1021 = vadd.xlane.f32.xlu2 %v1020_v58  ;;  %v1239_v56 = vld [vmem:[%s4808_s3] sm:$0xf] }
 0x311   : > { %v1006_v61 = vmul.f32 1.442695, %v994_v57  ;;  %v1023_v62 = vsel %vm770_vm2, %v4378_v59, 0.0  ;;  %v1252_v57 = vsel %vm1067_vm3, %v1239_v56, 0 }
 0x312   : > { %v4380_v63 = vpop.eup %4379  ;;  %4381 = vpow2.f32 %v1008_v60  ;;  %1024 = vadd.xlane.f32.xlu1 %v1023_v62 }
 0x313   : > { %v1046_v0 = vmul.f32 %v4380_v63, %v4372_v15  ;;  %4383 = vpow2.f32 %v1006_v61  ;;  %v986_v1 = vpop.xlane.xlu1 %985 }
 0x314   : > { %v996_v2 = vsub.f32 %v964_v29, %v986_v1 }
 0x315   : > { %v1054_v3 = vpack.c.bf16 %v1046_v0, %v1046_v0  ;;  %v1127_v6 = vpop.permute.xlu2 %1126 }
 0x316   : > { %v1010_v7 = vmul.f32 1.442695, %v996_v2  ;;  %v1132_v8 = vsel %vm1067_vm3, %v1127_v6, 0 }
 0x317   : > { %3465 = vmatmul.msk.bf16.vlgmr.msra.gmra.mxu1 %vm770_vm2, %v1054_v3  ;;  %1141 = vmatpush.bf16.msrb.mxu0 %v1132_v8 }
 0x318   : > { %v4947_v9 = vpop.eup %4381  ;;  %4385 = vpow2.f32 %v1010_v7  ;;  %v1240_v7 = vld [vmem:[%s4808_s3 + $0x4] sm:$0xf] }
 0x319   : > { %v4384_v10 = vpop.eup %4383  ;;  %v1029_v11 = vsel %vm770_vm2, %v4947_v9, 0.0  ;;  %v1277_v8 = vsel %vm1067_vm3, %v1240_v7, 0  ;;  %v4585_v7 = vmov 32.0  }
 0x31a   : > { %v1026_v12 = vsel %vm770_vm2, %v4384_v10, 0.0  ;;  %1030 = vadd.xlane.f32.xlu1 %v1029_v11 }
 0x31b   : > { %1027 = vadd.xlane.f32.xlu0 %v1026_v12 }
 0x31e   : > { %v4386_v13 = vpop.eup %4385 }
 0x31f   : > { %v1032_v14 = vsel %vm770_vm2, %v4386_v13, 0.0 }
 0x320   : > { %1033 = vadd.xlane.f32.xlu2 %v1032_v14 }
 0x321   : > { %v1085_v15 = vpop.permute.xlu0 %1084 }
 0x322   : > { %v1090_v18 = vsel %vm1067_vm3, %v1085_v15, 0 }
 0x323   : > { %1099 = vmatpush.bf16.msra.mxu2 %v1090_v18 }
 0x32f   : > { %1147 = vrot.lane.b32.xlu0 %v4900_v45, %s4584_s22 }
 0x333   : > { %1168 = vrot.lane.b32.xlu1 %v4889_v35, %s4584_s22 }
 0x337   : > { %1210 = vrot.lane.b32.xlu0 %v4896_v43, %s4584_s22 }
 0x338   : > { %1189 = vrot.lane.b32.xlu2 %v4898_v44, %s4584_s22 }
 0x34c   : > { %v1019_v19 = vpop.xlane.xlu0 %1018 }
 0x34d   : > { %4387 = vrcp.f32 %v1019_v19 }
 0x34e   : > { %v989_v20 = vpop.xlane.xlu2 %988 }
 0x34f   : > { %v997_v21 = vsub.f32 %v965_v42, %v989_v20 }
 0x351   : > { %v1012_v16 = vmul.f32 1.442695, %v997_v21 }
 0x353   : > { %v4388_v22 = vpop.eup %4387  ;;  %4389 = vpow2.f32 %v1012_v16 }
 0x354   : > { %v1047_v23 = vmul.f32 %v4388_v22, %v4938_v41 }
 0x356   : > { %v1055_v24 = vpack.c.bf16 %v1047_v23, %v1047_v23 }
 0x358   : > { %3466 = vmatmul.msk.bf16.vlgmr.msra.gmra.mxu2 %vm770_vm2, %v1055_v24 }
 0x359   : > { %v4390_v45 = vpop.eup %4389 }
 0x35a   : > { %v1035_v35 = vsel %vm770_vm2, %v4390_v45, 0.0 }
 0x35d   : > { %1036 = vadd.xlane.f32.xlu1 %v1035_v35 }
 0x383   : > { %v1022_v43 = vpop.xlane.xlu2 %1021 }
 0x384   : > { %4391 = vrcp.f32 %v1022_v43 }
 0x385   : > { %v1025_v25 = vpop.xlane.xlu1 %1024 }
 0x386   : > { %4393 = vrcp.f32 %v1025_v25 }
 0x38a   : > { %v4392_v44 = vpop.eup %4391 }
 0x38b   : > { %v1048_v26 = vmul.f32 %v4392_v44, %v4376_v54 }
 0x38c   : > { %v4394_v27 = vpop.eup %4393 }
 0x38d   : > { %v1056_v28 = vpack.c.bf16 %v1048_v26, %v1048_v26  ;;  %v1049_v29 = vmul.f32 %v4394_v27, %v4378_v59  ;;  %v1031_v36 = vpop.xlane.xlu1 %1030 }
 0x38e   : > { %v1028_v32 = vpop.xlane.xlu0 %1027 }
 0x38f   : > { %v1057_v30 = vpack.c.bf16 %v1049_v29, %v1049_v29  ;;  %3467 = vmatmul.msk.bf16.vlgmr.msra.gmra.mxu3 %vm770_vm2, %v1056_v28  ;;  %v1242_v28 = vld [vmem:[%s4808_s3 + $0xc] sm:$0xf] }
 0x390   : > { %v1327_v29 = vsel %vm1067_vm3, %v1242_v28, 0 }
 0x391   : > { %3468 = vmatmul.msk.bf16.vlgmr.msrb.gmra.mxu0 %vm770_vm2, %v1057_v30 }
 0x393   : > { %v1034_v31 = vpop.xlane.xlu2 %1033 }
 0x394   : > { %4395 = vrcp.f32 %v1034_v31  ;;  %v1080_v34 = vpop.f32.mrf.mxu1 }
 0x395   : > { %4397 = vrcp.f32 %v1028_v32  ;;  %v1231_v61 = vpack.c.bf16 %v1080_v34, %v1080_v34 }
 0x396   : > { %4399 = vrcp.f32 %v1031_v36 }
 0x397   : > { %v1245_v1 = vunpack.c.l.b16 %v1231_v61 }
 0x39a   : > { %v4396_v37 = vpop.eup %4395 }
 0x39b   : > { %v1052_v38 = vmul.f32 %v4396_v37, %v4386_v13  ;;  %v1190_v39 = vpop.permute.xlu2 %1189  ;;  %v4398_v42 = vpop.eup %4397 }
 0x39c   : > { %v1195_v40 = vsel %vm1067_vm3, %v1190_v39, 0  ;;  %v1082_v41 = vpop.f32.mrf.mxu1  ;;  %v1050_v47 = vmul.f32 %v4398_v42, %v4384_v10  ;;  %v4400_v48 = vpop.eup %4399  ;;  %v1241_v10 = vld [vmem:[%s4808_s3 + $0x8] sm:$0xf] }
 0x39d   : > { %v1060_v46 = vpack.c.bf16 %v1052_v38, %v1052_v38  ;;  %1204 = vmatpush.bf16.msrb.mxu3 %v1195_v40  ;;  %v1051_v51 = vmul.f32 %v4400_v48, %v4947_v9  ;;  %v1302_v12 = vsel %vm1067_vm3, %v1241_v10, 0 }
 0x39e   : > { %v1058_v17 = vpack.c.bf16 %v1050_v47, %v1050_v47 }
 0x39f   : > { %v1059_v53 = vpack.c.bf16 %v1051_v51, %v1051_v51  ;;  %v4365_v51 = vld [vmem:[%s5391_s27] ss:$0 sm:$0xff] }
 0x3a0   : > { %3471 = vmatmul.msk.bf16.vlgmr.msrb.gmra.mxu3 %vm770_vm2, %v1060_v46 }
 0x3a1   : > { %v1148_v49 = vpop.permute.xlu0 %1147  ;;  %1311 = vmatpush.bf16.msra.mxu3 %v1302_v12 }
 0x3a2   : > { %v1153_v50 = vsel %vm1067_vm3, %v1148_v49, 0 }
 0x3a3   : > { %1162 = vmatpush.bf16.msrb.mxu1 %v1153_v50 }
 0x3a5   : > { %v1169_v33 = vpop.permute.xlu1 %1168 }
 0x3a6   : > { %3469 = vmatmul.msk.bf16.vlgmr.msrb.gmra.mxu1 %vm770_vm2, %v1058_v17  ;;  %v1174_v52 = vsel %vm1067_vm3, %v1169_v33, 0 }
 0x3a7   : > { %1183 = vmatpush.bf16.msrb.mxu2 %v1174_v52  ;;  %1261 = vmatpush.bf16.msra.mxu1 %v1252_v57 }
 0x3a9   : > { %v1211_v54 = vpop.permute.xlu0 %1210 }
 0x3aa   : > { %v1216_v55 = vsel %vm1067_vm3, %v1211_v54, 0  ;;  %3470 = vmatmul.msk.bf16.vlgmr.msrb.gmra.mxu2 %vm770_vm2, %v1059_v53 }
 0x3ab   : > { %1225 = vmatpush.bf16.msra.mxu0 %v1216_v55  ;;  %1286 = vmatpush.bf16.msra.mxu2 %v1277_v8 }
 0x3af   : > { %1336 = vmatpush.bf16.msrb.mxu0 %v1327_v29  ;;  %v4158_v29 = vld [vmem:[%s4814_s23 + $0x8c] sm:$0xf] }
 0x3d0   : > { %v1037_v58 = vpop.xlane.xlu1 %1036 }
 0x3d1   : > { %4401 = vrcp.f32 %v1037_v58 }
 0x3d2   : > { %4403 = vrcp.f32 %v4585_v7 }
 0x3d7   : > { %v4402_v59 = vpop.eup %4401 }
 0x3d8   : > { %v1053_v60 = vmul.f32 %v4402_v59, %v4390_v45  ;;  %v4404_v8 = vpop.eup %4403 }
 0x3d9   : > { %vm1378_vm4 = vweird.f32 %v4404_v8 }
 0x3da   : > { %v1061_v62 = vpack.c.bf16 %v1053_v60, %v1053_v60 }
 0x3db   : > { %v1101_v63 = vpop.f32.mrf.mxu2 }
 0x3dc   : > { %v1232_v0 = vpack.c.bf16 %v1101_v63, %v1101_v63  ;;  %3472 = vmatmul.msk.bf16.vlgmr.msra.gmra.mxu0 %vm770_vm2, %v1061_v62 }
 0x3de   : > { %v1246_v2 = vunpack.c.l.b16 %v1232_v0 }
 0x3e0   : > { %v1247_v3 = vpack.c.b16 %v1246_v2, %v1245_v1 }
 0x3e2   : > { %3473 = vmatmul.msk.bf16.vlgmr.msra.gmra.mxu1 %vm770_vm2, %v1247_v3 }
 0x3e3   : > { %v1103_v6 = vpop.f32.mrf.mxu2 }
 0x40e   : > { %v1143_v9 = vpop.f32.mrf.mxu0 }
 0x40f   : > { %v1234_v11 = vpack.c.bf16 %v1143_v9, %v1143_v9  ;;  %v1374_v9 = vmul.f32 32.0, %v4404_v8 }
 0x411   : > { %v1271_v15 = vunpack.c.l.b16 %v1234_v11  ;;  %v1375_v10 = vsub.f32 1.0, %v1374_v9  ;;  %v3503_v9 = vld [vmem:[%s4814_s23 + $0x18] sm:$0xf] }
 0x412   : > { %v1122_v13 = vpop.f32.mrf.mxu3 }
 0x413   : > { %v1233_v14 = vpack.c.bf16 %v1122_v13, %v1122_v13 }
 0x415   : > { %v1270_v18 = vunpack.c.l.b16 %v1233_v14 }
 0x416   : > { %v1145_v19 = vpop.f32.mrf.mxu0 }
 0x417   : > { %v1272_v20 = vpack.c.b16 %v1271_v15, %v1270_v18 }
 0x419   : > { %3474 = vmatmul.msk.bf16.vlgmr.msra.gmra.mxu2 %vm770_vm2, %v1272_v20 }
 0x41a   : > { %v1124_v21 = vpop.f32.mrf.mxu3 }
 0x423   : > { %v1164_v16 = vpop.f32.mrf.mxu1  ;;  %v1206_v22 = vpop.f32.mrf.mxu3 }
 0x424   : > { %v1235_v45 = vpack.c.bf16 %v1164_v16, %v1164_v16  ;;  %v1237_v30 = vpack.c.bf16 %v1206_v22, %v1206_v22 }
 0x426   : > { %v1295_v25 = vunpack.c.l.b16 %v1235_v45  ;;  %v1320_v34 = vunpack.c.l.b16 %v1237_v30  ;;  %v4157_v45 = vld [vmem:[%s4814_s23 + $0x84] sm:$0xf]  ;;  %v3553_v30 = vld [vmem:[%s4814_s23 + $0xc8] sm:$0xf0] }
 0x42b   : > { %v1166_v23 = vpop.f32.mrf.mxu1  ;;  %v1208_v24 = vpop.f32.mrf.mxu3 }
 0x42c   : > { %v3543_v23 = vld [vmem:[%s4814_s23 + $0x80] sm:$0xf] }
 0x42d   : > { %v1185_v35 = vpop.f32.mrf.mxu2  ;;  %v4165_v24 = vld [vmem:[%s4814_s23 + $0xbc] sm:$0xf0] }
 0x42e   : > { %v1236_v43 = vpack.c.bf16 %v1185_v35, %v1185_v35  ;;  %v3544_v35 = vor.u32 %v4165_v24, %v3543_v23 }
 0x430   : > { %v1296_v44 = vunpack.c.l.b16 %v1236_v43  ;;  %v3545_v43 = vld [vmem:[%s4814_s23 + $0xc0] sm:$0xf0]  ;;  %1666 = vmatpush.bf16.msrb.mxu1 %v3544_v35 }
 0x432   : > { %v1297_v26 = vpack.c.b16 %v1296_v44, %v1295_v25  ;;  %v3551_v25 = vld [vmem:[%s4814_s23 + $0x88] sm:$0xf] }
 0x433   : > { %v4166_v44 = vld [vmem:[%s4814_s23 + $0xc4] sm:$0xf0] }
 0x434   : > { %3475 = vmatmul.msk.bf16.vlgmr.msra.gmra.mxu3 %vm770_vm2, %v1297_v26  ;;  %v3552_v28 = vor.u32 %v4166_v44, %v3551_v25  ;;  %v4366_v25 = vld [vmem:[%s5392_s24] ss:$0 sm:$0xff] }
 0x435   : > { %v1187_v27 = vpop.f32.mrf.mxu2 }
 0x436   : > { %v3548_v27 = vor.u32 %v4157_v45, %v3545_v43  ;;  %1694 = vmatpush.bf16.msrb.mxu3 %v3552_v28  ;;  %v4367_v28 = vld [vmem:[%s672_s21] ss:$0 sm:$0xff] }
 0x438   : > { %1680 = vmatpush.bf16.msrb.mxu2 %v3548_v27 }
 0x459   : > { %v1227_v31 = vpop.f32.mrf.mxu0 }
 0x45a   : > { %v1238_v32 = vpack.c.bf16 %v1227_v31, %v1227_v31 }
 0x45c   : > { %v1321_v36 = vunpack.c.l.b16 %v1238_v32  ;;  %v3556_v32 = vor.u32 %v4158_v29, %v3553_v30 }
 0x45e   : > { %v1322_v37 = vpack.c.b16 %v1321_v36, %v1320_v34  ;;  %v3479_v34 = vld [vmem:[%s4814_s23] sm:$0xf]  ;;  %1708 = vmatpush.bf16.msra.mxu0 %v3556_v32 }
 0x45f   : > { %v1263_v40 = vpop.f32.mrf.mxu1  ;;  %v4149_v36 = vld [vmem:[%s4814_s23 + $0x3c] sm:$0xf0] }
 0x460   : > { %3476 = vmatmul.msk.bf16.vlgmr.msrb.gmra.mxu0 %vm770_vm2, %v1322_v37  ;;  %v1343_v46 = vsel %vm719_vm1, %v1263_v40, 0.0  ;;  %v4141_v37 = vld [vmem:[%s4814_s23 + $0x4] sm:$0xf]  ;;  %v3575_v32 = vld [vmem:[%s4814_s23 + $0xa0] sm:$0xf] }
 0x461   : > { %v1229_v38 = vpop.f32.mrf.mxu0  ;;  %v3481_v40 = vld [vmem:[%s4814_s23 + $0x40] sm:$0xf0] }
 0x467   : > { %v1265_v52 = vpop.f32.mrf.mxu1 }
 0x468   : > { %v1350_v57 = vsel %vm719_vm1, %v1265_v52, 0.0  ;;  %v4159_v52 = vld [vmem:[%s4814_s23 + $0x94] sm:$0xf] }
 0x49c   : > { %v1288_v39 = vpop.f32.mrf.mxu2 }
 0x49d   : > { %v1344_v42 = vsel %vm719_vm1, %v1288_v39, 0.0  ;;  %v3480_v39 = vor.u32 %v4149_v36, %v3479_v34  ;;  %v4161_v34 = vld [vmem:[%s4814_s23 + $0xa4] sm:$0xf] }
 0x49e   : > { %v1345_v48 = vadd.f32 %v1344_v42, %v1343_v46  ;;  %v3484_v42 = vor.u32 %v4141_v37, %v3481_v40  ;;  %v4150_v46 = vld [vmem:[%s4814_s23 + $0x44] sm:$0xf0]  ;;  %v3577_v36 = vld [vmem:[%s4814_s23 + $0xe0] sm:$0xf0] }
 0x49f   : > { %1667 = vmatpush.bf16.msrb.mxu1 %v3480_v39  ;;  %v3583_v37 = vld [vmem:[%s4814_s23 + $0xa8] sm:$0xf] }
 0x4a0   : > { %1681 = vmatpush.bf16.msrb.mxu2 %v3484_v42  ;;  %v4170_v40 = vld [vmem:[%s4814_s23 + $0xe4] sm:$0xf0] }
 0x4a4   : > { %v1290_v49 = vpop.f32.mrf.mxu2 }
 0x4a5   : > { %v1351_v55 = vsel %vm719_vm1, %v1290_v49, 0.0 }
 0x4a6   : > { %v1352_v59 = vadd.f32 %v1351_v55, %v1350_v57  ;;  %v3561_v55 = vld [vmem:[%s4814_s23 + $0xd0] sm:$0xf0]  ;;  %v4168_v57 = vld [vmem:[%s4814_s23 + $0xd4] sm:$0xf0] }
 0x4b7   : > { %v1313_v41 = vpop.f32.mrf.mxu3 }
 0x4b8   : > { %v1346_v47 = vsel %vm719_vm1, %v1313_v41, 0.0  ;;  %v3487_v41 = vld [vmem:[%s4814_s23 + $0x8] sm:$0xf] }
 0x4b9   : > { %v1347_v50 = vadd.f32 %v1346_v47, %v1345_v48  ;;  %v4142_v47 = vld [vmem:[%s4814_s23 + $0xc] sm:$0xf]  ;;  %v3488_v49 = vor.u32 %v4150_v46, %v3487_v41 }
 0x4ba   : > { %v3489_v48 = vld [vmem:[%s4814_s23 + $0x48] sm:$0xf0] }
 0x4bb   : > { %1695 = vmatpush.bf16.msrb.mxu3 %v3488_v49  ;;  %v4162_v41 = vld [vmem:[%s4814_s23 + $0xac] sm:$0xf]  ;;  %v4153_v49 = vld [vmem:[%s4814_s23 + $0x5c] sm:$0xf0] }
 0x4bf   : > { %v1315_v53 = vpop.f32.mrf.mxu3 }
 0x4c0   : > { %v1353_v58 = vsel %vm719_vm1, %v1315_v53, 0.0 }
 0x4c1   : > { %v1354_v61 = vadd.f32 %v1353_v58, %v1352_v59  ;;  %v3564_v58 = vor.u32 %v4159_v52, %v3561_v55  ;;  %v3519_v52 = vld [vmem:[%s4814_s23 + $0x28] sm:$0xf]  ;;  %v3521_v55 = vld [vmem:[%s4814_s23 + $0x68] sm:$0xf0] }
 0x4c3   : > { %1736 = vmatpush.bf16.msra.mxu2 %v3564_v58 }
 0x4dd   : > { %v1338_v17 = vpop.f32.mrf.mxu0 }
 0x4de   : > { %v1348_v33 = vsel %vm719_vm1, %v1338_v17, 0.0 }
 0x4df   : > { %v1349_v54 = vadd.f32 %v1348_v33, %v1347_v50  ;;  %v3492_v50 = vor.u32 %v4142_v47, %v3489_v48  ;;  %v4167_v33 = vld [vmem:[%s4814_s23 + $0xcc] sm:$0xf0]  ;;  %v3580_v47 = vor.u32 %v4161_v34, %v3577_v36  ;;  %v3511_v48 = vld [vmem:[%s4814_s23 + $0x20] sm:$0xf] }
 0x4e0   : > { %v4185_v34 = vld [vmem:[%s4816_s12 + $0x60] sm:$0xff] }
 0x4e1   : > { %v1361_v56 = vadd.f32 %v4365_v51, %v1349_v54  ;;  %1709 = vmatpush.bf16.msra.mxu0 %v3492_v50  ;;  %v3584_v50 = vor.u32 %v4170_v40, %v3583_v37  ;;  %v4193_v36 = vld [vmem:[%s4816_s12 + $0xa0] sm:$0xff]  ;;  %v4176_v37 = vld [vmem:[%s4816_s12 + $0x18] sm:$0xff] }
 0x4e2   : > { %v4200_v40 = vld [vmem:[%s4816_s12 + $0xd8] sm:$0xff] }
 0x4e3   : > { %v1363_v60 = vadd.f32 %v1361_v56, %v4869_v4  ;;  %v1376_v4 = vmul.f32 %v4404_v8, %v1375_v10  ;;  %v3567_v56 = vld [vmem:[%s4814_s23 + $0x98] sm:$0xf] }
 0x4e4   : > { %v3568_v59 = vor.u32 %v4168_v57, %v3567_v56  ;;  %v4152_v10 = vld [vmem:[%s4814_s23 + $0x54] sm:$0xf0]  ;;  %v3512_v56 = vor.u32 %v4153_v49, %v3511_v48  ;;  %v4183_v48 = vld [vmem:[%s4816_s12 + $0x50] sm:$0xff] }
 0x4e5   : > { %v1340_v62 = vpop.f32.mrf.mxu0  ;;  %v1367_v63 = vsel %vm719_vm1, %v1363_v60, 0.0  ;;  %v1377_v11 = vadd.f32 %v4404_v8, %v1376_v4  ;;  %v4191_v49 = vld [vmem:[%s4816_s12 + $0x90] sm:$0xff] }
 0x4e6   : > { %v1355_v0 = vsel %vm719_vm1, %v1340_v62, 0.0  ;;  %1368 = vadd.xlane.f32.xlu0 %v1367_v63  ;;  %v3495_v62 = vld [vmem:[%s4814_s23 + $0x10] sm:$0xf]  ;;  %1750 = vmatpush.bf16.msra.mxu3 %v3568_v59 }
 0x4e7   : > { %v1356_v1 = vadd.f32 %v1355_v0, %v1354_v61  ;;  %v5005_v12 = vsel %vm1378_vm4, %v4404_v8, %v1377_v11  ;;  %v3569_v61 = vld [vmem:[%s4814_s23 + $0xd8] sm:$0xf0]  ;;  %v3497_v8 = vld [vmem:[%s4814_s23 + $0x50] sm:$0xf0]  ;;  %v3504_v11 = vor.u32 %v4152_v10, %v3503_v9  ;;  %v4155_v9 = vld [vmem:[%s4814_s23 + $0x6c] sm:$0xf0] }
 0x4e9   : > { %v1362_v2 = vadd.f32 %v4365_v51, %v1356_v1  ;;  %v3559_v51 = vld [vmem:[%s4814_s23 + $0x90] sm:$0xf] }
 0x4ea   : > { %v3560_v54 = vor.u32 %v4167_v33, %v3559_v51  ;;  %1751 = vmatpush.bf16.msra.mxu3 %v3504_v11  ;;  %v4145_v51 = vld [vmem:[%s4814_s23 + $0x24] sm:$0xf]  ;;  %v4147_v11 = vld [vmem:[%s4814_s23 + $0x34] sm:$0xf] }
 0x4eb   : > { %v1364_v3 = vadd.f32 %v1362_v2, %v4871_v5  ;;  %v4151_v2 = vld [vmem:[%s4814_s23 + $0x4c] sm:$0xf0]  ;;  %v3513_v33 = vld [vmem:[%s4814_s23 + $0x60] sm:$0xf0] }
 0x4ec   : > { %1722 = vmatpush.bf16.msra.mxu1 %v3560_v54  ;;  %v3496_v7 = vor.u32 %v4151_v2, %v3495_v62  ;;  %v4146_v54 = vld [vmem:[%s4814_s23 + $0x2c] sm:$0xf]  ;;  %v3516_v57 = vor.u32 %v4145_v51, %v3513_v33  ;;  %v4163_v62 = vld [vmem:[%s4814_s23 + $0xb4] sm:$0xf]  ;;  %v4164_v2 = vld [vmem:[%s4814_s23 + $0xbc] sm:$0xf] }
 0x4ed   : > { %v1370_v6 = vsel %vm719_vm1, %v1364_v3, 0.0  ;;  %v3524_v59 = vor.u32 %v4146_v54, %v3521_v55  ;;  %v4190_v51 = vld [vmem:[%s4816_s12 + $0x88] sm:$0xff]  ;;  %v4173_v33 = vld [vmem:[%s4816_s12] sm:$0xff]  ;;  %v4236_v54 = vld [vmem:[%s4816_s12 + $0x1f8] sm:$0xff] }
 0x4ee   : > { %1371 = vadd.xlane.f32.xlu1 %v1370_v6  ;;  %v4181_v55 = vld [vmem:[%s4816_s12 + $0x40] sm:$0xff] }
 0x4f0   : > { %1723 = vmatpush.bf16.msra.mxu1 %v3496_v7 }
 0x559   : > { %v1369_v13 = vpop.xlane.xlu0 %1368 }
 0x55a   : > { %v1380_v5 = vmul.f32 %v5005_v12, %v1369_v13  ;;  %v4144_v13 = vld [vmem:[%s4814_s23 + $0x1c] sm:$0xf] }
 0x55c   : > { %v5008_v14 = vsub.f32 %v1363_v60, %v1380_v5  ;;  %v4160_v60 = vld [vmem:[%s4814_s23 + $0x9c] sm:$0xf] }
 0x55d   : > { %v3572_v1 = vor.u32 %v4160_v60, %v3569_v61  ;;  %v3505_v5 = vld [vmem:[%s4814_s23 + $0x58] sm:$0xf0]  ;;  %v3591_v60 = vld [vmem:[%s4814_s23 + $0xb0] sm:$0xf] }
 0x55e   : > { %v1384_v15 = vmul.f32 %v5008_v14, %v5008_v14  ;;  %v4171_v61 = vld [vmem:[%s4814_s23 + $0xec] sm:$0xf0] }
 0x55f   : > { %1764 = vmatpush.bf16.msrb.mxu0 %v3572_v1  ;;  %v4172_v1 = vld [vmem:[%s4814_s23 + $0xf4] sm:$0xf0] }
 0x560   : > { %v1386_v18 = vsel %vm719_vm1, %v1384_v15, 0.0 }
 0x561   : > { %1387 = vadd.xlane.f32.xlu1 %v1386_v18  ;;  %v1372_v19 = vpop.xlane.xlu1 %1371  ;;  %v3508_v18 = vor.u32 %v4144_v13, %v3505_v5  ;;  %v3529_v13 = vld [vmem:[%s4814_s23 + $0x70] sm:$0xf0]  ;;  %v3535_v5 = vld [vmem:[%s4814_s23 + $0x38] sm:$0xf] }
 0x562   : > { %v1381_v20 = vmul.f32 %v5005_v12, %v1372_v19 }
 0x563   : > { %1765 = vmatpush.bf16.msrb.mxu0 %v3508_v18  ;;  %v4148_v18 = vld [vmem:[%s4814_s23 + $0x3c] sm:$0xf] }
 0x564   : > { %v5014_v21 = vsub.f32 %v1364_v3, %v1381_v20  ;;  %v4143_v3 = vld [vmem:[%s4814_s23 + $0x14] sm:$0xf] }
 0x565   : > { %v3500_v4 = vor.u32 %v4143_v3, %v3497_v8  ;;  %v3601_v3 = vld [vmem:[%s4814_s23 + $0xf8] sm:$0xf0]  ;;  %v3527_v8 = vld [vmem:[%s4814_s23 + $0x30] sm:$0xf] }
 0x566   : > { %v1385_v16 = vmul.f32 %v5014_v21, %v5014_v21 }
 0x567   : > { %1737 = vmatpush.bf16.msra.mxu2 %v3500_v4  ;;  %v3604_v4 = vor.u32 %v4164_v2, %v3601_v3  ;;  %v4233_v2 = vld [vmem:[%s4816_s12 + $0x1e0] sm:$0xff]  ;;  %v4218_v3 = vld [vmem:[%s4816_s12 + $0x168] sm:$0xff] }
 0x568   : > { %v1389_v22 = vsel %vm719_vm1, %v1385_v16, 0.0 }
 0x569   : > { %1390 = vadd.xlane.f32.xlu2 %v1389_v22 }
 0x5d4   : > { %v1388_v26 = vpop.xlane.xlu1 %1387 }
 0x5d5   : > { %v1392_v31 = vmul.f32 %v1388_v26, %v5005_v12 }
 0x5d7   : > { %v5031_v38 = vadd.f32 1e-05, %v1392_v31 }
 0x5d9   : > { %4405 = vrsqrt.f32 %v5031_v38  ;;  %vm1402_vm6 = vweird.f32 %v5031_v38 }
 0x5dc   : > { %v1391_v17 = vpop.xlane.xlu2 %1390 }
 0x5dd   : > { %v1393_v53 = vmul.f32 %v1391_v17, %v5005_v12 }
 0x5df   : > { %v4406_v63 = vpop.eup %4405  ;;  %v1395_v0 = vadd.f32 1e-05, %v1393_v53  ;;  %v4154_v53 = vld [vmem:[%s4814_s23 + $0x64] sm:$0xf0] }
 0x5e0   : > { %v1397_v6 = vmul.f32 %v4406_v63, %v5031_v38  ;;  %vm1403_vm5 = vweird.f32 %v4406_v63  ;;  %v3520_v58 = vor.u32 %v4154_v53, %v3519_v52  ;;  %v4197_v52 = vld [vmem:[%s4816_s12 + $0xc0] sm:$0xff]  ;;  %v4212_v53 = vld [vmem:[%s4816_s12 + $0x138] sm:$0xff] }
 0x5e1   : > { %4407 = vrsqrt.f32 %v1395_v0  ;;  %vm1404_vm7 = vmor %vm1402_vm6, %vm1403_vm5  ;;  %vm1412_vm9 = vweird.f32 %v1395_v0 }
 0x5e2   : > { %v1398_v15 = vmul.f32 %v4406_v63, %v1397_v6  ;;  %v3592_v6 = vor.u32 %v4171_v61, %v3591_v60  ;;  %v4235_v60 = vld [vmem:[%s4816_s12 + $0x1f0] sm:$0xff] }
 0x5e3   : > { %v4219_v61 = vld [vmem:[%s4816_s12 + $0x170] sm:$0xff] }
 0x5e4   : > { %v1399_v19 = vmul.f32 0.5, %v1398_v15  ;;  %v4156_v15 = vld [vmem:[%s4814_s23 + $0x74] sm:$0xf0] }
 0x5e6   : > { %v1400_v20 = vsub.f32 1.5, %v1399_v19  ;;  %v3537_v19 = vld [vmem:[%s4814_s23 + $0x78] sm:$0xf0] }
 0x5e7   : > { %v4408_v16 = vpop.eup %4407 }
 0x5e8   : > { %v1401_v22 = vmul.f32 %v4406_v63, %v1400_v20  ;;  %v1407_v23 = vmul.f32 %v4408_v16, %v1395_v0  ;;  %vm1413_vm8 = vweird.f32 %v4408_v16  ;;  %v3599_v0 = vld [vmem:[%s4814_s23 + $0xb8] sm:$0xf]  ;;  %v3528_v20 = vor.u32 %v4155_v9, %v3527_v8  ;;  %v4217_v9 = vld [vmem:[%s4816_s12 + $0x160] sm:$0xff] }
 0x5e9   : > { %vm1414_vm10 = vmor %vm1412_vm9, %vm1413_vm8  ;;  %v3600_v10 = vor.u32 %v4172_v1, %v3599_v0  ;;  %v4234_v0 = vld [vmem:[%s4816_s12 + $0x1e8] sm:$0xff]  ;;  %v4209_v1 = vld [vmem:[%s4816_s12 + $0x120] sm:$0xff] }
 0x5ea   : > { %v1408_v24 = vmul.f32 %v4408_v16, %v1407_v23  ;;  %v1405_v45 = vsel %vm1404_vm7, %v4406_v63, %v1401_v22  ;;  %v3593_v63 = vld [vmem:[%s4814_s23 + $0xf0] sm:$0xf0]  ;;  %v3536_v22 = vor.u32 %v4156_v15, %v3535_v5  ;;  %v3540_v23 = vor.u32 %v4148_v18, %v3537_v19  ;;  %v4232_v8 = vld [vmem:[%s4816_s12 + $0x1d8] sm:$0xff]  ;;  %v4206_v15 = vld [vmem:[%s4816_s12 + $0x108] sm:$0xff] }
 0x5eb   : > { %v1416_v44 = vmul.f32 %v1405_v45, %v5008_v14  ;;  %v4169_v14 = vld [vmem:[%s4814_s23 + $0xdc] sm:$0xf0]  ;;  %v3596_v7 = vor.u32 %v4163_v62, %v3593_v63  ;;  %v4204_v45 = vld [vmem:[%s4816_s12 + $0xf8] sm:$0xff]  ;;  %v4227_v62 = vld [vmem:[%s4816_s12 + $0x1b0] sm:$0xff] }
 0x5ec   : > { %v1409_v35 = vmul.f32 0.5, %v1408_v24  ;;  %v3576_v46 = vor.u32 %v4169_v14, %v3575_v32  ;;  %v4180_v24 = vld [vmem:[%s4816_s12 + $0x38] sm:$0xff]  ;;  %v4177_v32 = vld [vmem:[%s4816_s12 + $0x20] sm:$0xff]  ;;  %v4210_v63 = vld [vmem:[%s4816_s12 + $0x128] sm:$0xff] }
 0x5ed   : > { %v1421_v29 = vmul.f32 %v4366_v25, %v1416_v44  ;;  %v4203_v44 = vld [vmem:[%s4816_s12 + $0xf0] sm:$0xff]  ;;  %v4201_v14 = vld [vmem:[%s4816_s12 + $0xe0] sm:$0xff]  ;;  %v4224_v5 = vld [vmem:[%s4816_s12 + $0x198] sm:$0xff] }
 0x5ee   : > { %v1410_v43 = vsub.f32 1.5, %v1409_v35  ;;  %v4188_v35 = vld [vmem:[%s4816_s12 + $0x78] sm:$0xff]  ;;  %v4230_v18 = vld [vmem:[%s4816_s12 + $0x1c8] sm:$0xff]  ;;  %v4215_v19 = vld [vmem:[%s4816_s12 + $0x150] sm:$0xff] }
 0x5ef   : > { %v5075_v38 = vadd.f32 %v4367_v28, %v1421_v29  ;;  %v4202_v29 = vld [vmem:[%s4816_s12 + $0xe8] sm:$0xff] }
 0x5f0   : > { %v1411_v26 = vmul.f32 %v4408_v16, %v1410_v43  ;;  %v4196_v43 = vld [vmem:[%s4816_s12 + $0xb8] sm:$0xff] }
 0x5f2   : > { %v1415_v27 = vsel %vm1414_vm10, %v4408_v16, %v1411_v26  ;;  %v3532_v16 = vor.u32 %v4147_v11, %v3529_v13  ;;  %v4187_v26 = vld [vmem:[%s4816_s12 + $0x70] sm:$0xff]  ;;  %v4216_v13 = vld [vmem:[%s4816_s12 + $0x158] sm:$0xff] }
 0x5f3   : > { %v1417_v30 = vmul.f32 %v1415_v27, %v5014_v21  ;;  %v3585_v21 = vld [vmem:[%s4814_s23 + $0xe8] sm:$0xf0]  ;;  %v4195_v27 = vld [vmem:[%s4816_s12 + $0xb0] sm:$0xff] }
 0x5f4   : > { %v3588_v17 = vor.u32 %v4162_v41, %v3585_v21  ;;  %v4184_v41 = vld [vmem:[%s4816_s12 + $0x58] sm:$0xff]  ;;  %v4231_v11 = vld [vmem:[%s4816_s12 + $0x1d0] sm:$0xff] }
 0x5f5   : > { %v1422_v31 = vmul.f32 %v4366_v25, %v1417_v30  ;;  %v4179_v25 = vld [vmem:[%s4816_s12 + $0x30] sm:$0xff]  ;;  %v4186_v30 = vld [vmem:[%s4816_s12 + $0x68] sm:$0xff]  ;;  %v4192_v21 = vld [vmem:[%s4816_s12 + $0x98] sm:$0xff] }
 0x5f7   : > { %v5077_v39 = vadd.f32 %v4367_v28, %v1422_v31  ;;  %v4178_v28 = vld [vmem:[%s4816_s12 + $0x28] sm:$0xff] }
 0x5f8   : > { %v4194_v31 = vld [vmem:[%s4816_s12 + $0xa8] sm:$0xff] }
 0x5f9   : > { %v5084_v42 = vpack.c.bf16 %v5077_v39, %v5075_v38 }
 0x5fb   : > { %3605 = vmatmul.msk.bf16.vlgmr.msrb.gmra.mxu1 %vm719_vm1, %v5084_v42  ;;  %3606 = vmatmul.msk.bf16.vlgmr.msrb.gmra.mxu2 %vm719_vm1, %v5084_v42 }
 0x5fc   : > { %3607 = vmatmul.msk.bf16.vlgmr.msrb.gmra.mxu3 %vm719_vm1, %v5084_v42  ;;  %3608 = vmatmul.msk.bf16.vlgmr.msra.gmra.mxu0 %vm719_vm1, %v5084_v42 }
 0x5fd   : > { %1778 = vmatpush.bf16.msrb.mxu1 %v3576_v46  ;;  %1792 = vmatpush.bf16.msrb.mxu2 %v3580_v47  ;;  %v4175_v46 = vld [vmem:[%s4816_s12 + $0x10] sm:$0xff] }
 0x5fe   : > { %1806 = vmatpush.bf16.msrb.mxu3 %v3584_v50  ;;  %1820 = vmatpush.bf16.msra.mxu0 %v3588_v17  ;;  %v4199_v47 = vld [vmem:[%s4816_s12 + $0xd0] sm:$0xff]  ;;  %v4174_v50 = vld [vmem:[%s4816_s12 + $0x8] sm:$0xff] }
 0x5ff   : > { %v4182_v17 = vld [vmem:[%s4816_s12 + $0x48] sm:$0xff] }
 0x601   : > { %1779 = vmatpush.bf16.msrb.mxu1 %v3512_v56  ;;  %1793 = vmatpush.bf16.msrb.mxu2 %v3516_v57  ;;  %v4189_v56 = vld [vmem:[%s4816_s12 + $0x80] sm:$0xff]  ;;  %v4220_v57 = vld [vmem:[%s4816_s12 + $0x178] sm:$0xff] }
 0x602   : > { %1807 = vmatpush.bf16.msrb.mxu3 %v3520_v58  ;;  %1821 = vmatpush.bf16.msra.mxu0 %v3524_v59  ;;  %v4228_v58 = vld [vmem:[%s4816_s12 + $0x1b8] sm:$0xff]  ;;  %v4211_v59 = vld [vmem:[%s4816_s12 + $0x130] sm:$0xff] }
 0x60b   : > { %3609 = vmatmul.msk.bf16.vlgmr.msra.gmra.mxu1 %vm719_vm1, %v5084_v42  ;;  %3610 = vmatmul.msk.bf16.vlgmr.msra.gmra.mxu2 %vm719_vm1, %v5084_v42 }
 0x60c   : > { %3611 = vmatmul.msk.bf16.vlgmr.msra.gmra.mxu3 %vm719_vm1, %v5084_v42  ;;  %3612 = vmatmul.msk.bf16.vlgmr.msrb.gmra.mxu0 %vm719_vm1, %v5084_v42 }
 0x60d   : > { %1834 = vmatpush.bf16.msra.mxu1 %v3592_v6  ;;  %1848 = vmatpush.bf16.msra.mxu2 %v3596_v7  ;;  %v4226_v6 = vld [vmem:[%s4816_s12 + $0x1a8] sm:$0xff]  ;;  %v4208_v7 = vld [vmem:[%s4816_s12 + $0x118] sm:$0xff] }
 0x60e   : > { %1862 = vmatpush.bf16.msra.mxu3 %v3600_v10  ;;  %1876 = vmatpush.bf16.msrb.mxu0 %v3604_v4  ;;  %v4225_v10 = vld [vmem:[%s4816_s12 + $0x1a0] sm:$0xff]  ;;  %v4207_v4 = vld [vmem:[%s4816_s12 + $0x110] sm:$0xff] }
 0x611   : > { %1835 = vmatpush.bf16.msra.mxu1 %v3528_v20  ;;  %1849 = vmatpush.bf16.msra.mxu2 %v3532_v16  ;;  %v4223_v20 = vld [vmem:[%s4816_s12 + $0x190] sm:$0xff]  ;;  %v4205_v16 = vld [vmem:[%s4816_s12 + $0x100] sm:$0xff] }
 0x612   : > { %1863 = vmatpush.bf16.msra.mxu3 %v3536_v22  ;;  %1877 = vmatpush.bf16.msrb.mxu0 %v3540_v23  ;;  %v4229_v22 = vld [vmem:[%s4816_s12 + $0x1c0] sm:$0xff]  ;;  %v4214_v23 = vld [vmem:[%s4816_s12 + $0x148] sm:$0xff] }
 0x61b   : > { %3613 = vmatmul.msk.bf16.vlgmr.msrb.gmra.mxu1 %vm719_vm1, %v5084_v42  ;;  %3614 = vmatmul.msk.bf16.vlgmr.msrb.gmra.mxu2 %vm719_vm1, %v5084_v42 }
 0x61c   : > { %3615 = vmatmul.msk.bf16.vlgmr.msrb.gmra.mxu3 %vm719_vm1, %v5084_v42  ;;  %3616 = vmatmul.msk.bf16.vlgmr.msra.gmra.mxu0 %vm719_vm1, %v5084_v42 }
 0x61d   : > { %2960 = vmatpush.bf16.msrb.mxu1 %v4180_v24  ;;  %3002 = vmatpush.bf16.msra.mxu0 %v4204_v45  ;;  %v4222_v24 = vld [vmem:[%s4816_s12 + $0x188] sm:$0xff]  ;;  %v4213_v45 = vld [vmem:[%s4816_s12 + $0x140] sm:$0xff] }
 0x61e   : > { %2974 = vmatpush.bf16.msrb.mxu2 %v4188_v35  ;;  %2988 = vmatpush.bf16.msrb.mxu3 %v4196_v43  ;;  %v4221_v35 = vld [vmem:[%s4816_s12 + $0x180] sm:$0xff]  ;;  %v5207_v43 = vld [vmem:[%s4850_s2] sm:$0xff] }
 0x621   : > { %2961 = vmatpush.bf16.msrb.mxu1 %v4179_v25  ;;  %3003 = vmatpush.bf16.msra.mxu0 %v4203_v44 }
 0x622   : > { %2975 = vmatpush.bf16.msrb.mxu2 %v4187_v26  ;;  %2989 = vmatpush.bf16.msrb.mxu3 %v4195_v27  ;;  %v1465_v26 = vperm.slane %v5207_v43, 0  ;;  %v1468_v27 = vperm.slane %v5207_v43, 3 }
 0x625   : > { %2962 = vmatpush.bf16.msrb.mxu1 %v4178_v28  ;;  %3004 = vmatpush.bf16.msra.mxu0 %v4202_v29 }
 0x626   : > { %2976 = vmatpush.bf16.msrb.mxu2 %v4186_v30  ;;  %2990 = vmatpush.bf16.msrb.mxu3 %v4194_v31 }
 0x629   : > { %2963 = vmatpush.bf16.msrb.mxu1 %v4177_v32  ;;  %3005 = vmatpush.bf16.msra.mxu0 %v4201_v14  ;;  %v1466_v14 = vperm.slane %v5207_v43, 1 }
 0x62a   : > { %2977 = vmatpush.bf16.msrb.mxu2 %v4185_v34  ;;  %2991 = vmatpush.bf16.msrb.mxu3 %v4193_v36 }
 0x62b   : > { %3617 = vmatmul.msk.bf16.vlgmr.msra.gmra.mxu1 %vm719_vm1, %v5084_v42  ;;  %3618 = vmatmul.msk.bf16.vlgmr.msra.gmra.mxu2 %vm719_vm1, %v5084_v42 }
 0x62c   : > { %3619 = vmatmul.msk.bf16.vlgmr.msra.gmra.mxu3 %vm719_vm1, %v5084_v42  ;;  %3620 = vmatmul.msk.bf16.vlgmr.msrb.gmra.mxu0 %vm719_vm1, %v5084_v42  ;;  %v4198_v42 = vld [vmem:[%s4816_s12 + $0xc8] sm:$0xff] }
 0x62d   : > { %2964 = vmatpush.bf16.msrb.mxu1 %v4176_v37  ;;  %3006 = vmatpush.bf16.msra.mxu0 %v4200_v40  ;;  %v1467_v37 = vperm.slane %v5207_v43, 2 }
 0x62e   : > { %2978 = vmatpush.bf16.msrb.mxu2 %v4184_v41  ;;  %2992 = vmatpush.bf16.msrb.mxu3 %v4192_v21 }
 0x631   : > { %2965 = vmatpush.bf16.msrb.mxu1 %v4175_v46  ;;  %3007 = vmatpush.bf16.msra.mxu0 %v4199_v47 }
 0x632   : > { %2979 = vmatpush.bf16.msrb.mxu2 %v4183_v48  ;;  %2993 = vmatpush.bf16.msrb.mxu3 %v4191_v49  ;;  %v4244_v48 = vld [vmem:[%s4816_s12 + $0x238] sm:$0xff] }
 0x635   : > { %2966 = vmatpush.bf16.msrb.mxu1 %v4174_v50  ;;  %3008 = vmatpush.bf16.msra.mxu0 %v4198_v42  ;;  %v4268_v42 = vld [vmem:[%s4816_s12 + $0x2f8] sm:$0xff] }
 0x636   : > { %2980 = vmatpush.bf16.msrb.mxu2 %v4182_v17  ;;  %2994 = vmatpush.bf16.msrb.mxu3 %v4190_v51 }
 0x639   : > { %2967 = vmatpush.bf16.msrb.mxu1 %v4173_v33  ;;  %3009 = vmatpush.bf16.msra.mxu0 %v4197_v52 }
 0x63a   : > { %2981 = vmatpush.bf16.msrb.mxu2 %v4181_v55  ;;  %2995 = vmatpush.bf16.msrb.mxu3 %v4189_v56  ;;  %v4243_v56 = vld [vmem:[%s4816_s12 + $0x230] sm:$0xff] }
 0x63d   : > { %3016 = vmatpush.bf16.msra.mxu1 %v4212_v53  ;;  %3058 = vmatpush.bf16.msrb.mxu0 %v4236_v54 }
 0x63e   : > { %3030 = vmatpush.bf16.msra.mxu2 %v4220_v57  ;;  %3044 = vmatpush.bf16.msra.mxu3 %v4228_v58 }
 0x641   : > { %3017 = vmatpush.bf16.msra.mxu1 %v4211_v59  ;;  %3059 = vmatpush.bf16.msrb.mxu0 %v4235_v60  ;;  %v4267_v60 = vld [vmem:[%s4816_s12 + $0x2f0] sm:$0xff] }
 0x642   : > { %3031 = vmatpush.bf16.msra.mxu2 %v4219_v61  ;;  %3045 = vmatpush.bf16.msra.mxu3 %v4227_v62 }
 0x645   : > { %3018 = vmatpush.bf16.msra.mxu1 %v4210_v63  ;;  %3060 = vmatpush.bf16.msrb.mxu0 %v4234_v0  ;;  %v4252_v63 = vld [vmem:[%s4816_s12 + $0x278] sm:$0xff] }
 0x646   : > { %3032 = vmatpush.bf16.msra.mxu2 %v4218_v3  ;;  %3046 = vmatpush.bf16.msra.mxu3 %v4226_v6  ;;  %v1472_v6 = vperm.slane %v5207_v43, 7 }
 0x649   : > { %3019 = vmatpush.bf16.msra.mxu1 %v4209_v1  ;;  %3061 = vmatpush.bf16.msrb.mxu0 %v4233_v2  ;;  %v1469_v1 = vperm.slane %v5207_v43, 4  ;;  %v4260_v2 = vld [vmem:[%s4816_s12 + $0x2b8] sm:$0xff] }
 0x64a   : > { %3033 = vmatpush.bf16.msra.mxu2 %v4217_v9  ;;  %3047 = vmatpush.bf16.msra.mxu3 %v4225_v10  ;;  %v4251_v10 = vld [vmem:[%s4816_s12 + $0x270] sm:$0xff] }
 0x64d   : > { %3020 = vmatpush.bf16.msra.mxu1 %v4208_v7  ;;  %3062 = vmatpush.bf16.msrb.mxu0 %v4232_v8  ;;  %v4242_v7 = vld [vmem:[%s4816_s12 + $0x228] sm:$0xff] }
 0x64e   : > { %3034 = vmatpush.bf16.msra.mxu2 %v4216_v13  ;;  %3048 = vmatpush.bf16.msra.mxu3 %v4224_v5  ;;  %v4266_v8 = vld [vmem:[%s4816_s12 + $0x2e8] sm:$0xff]  ;;  %v4259_v13 = vld [vmem:[%s4816_s12 + $0x2b0] sm:$0xff] }
 0x651   : > { %3021 = vmatpush.bf16.msra.mxu1 %v4207_v4  ;;  %3063 = vmatpush.bf16.msrb.mxu0 %v4231_v11 }
 0x652   : > { %3035 = vmatpush.bf16.msra.mxu2 %v4215_v19  ;;  %3049 = vmatpush.bf16.msra.mxu3 %v4223_v20  ;;  %v1470_v19 = vperm.slane %v5207_v43, 5 }
 0x655   : > { %3022 = vmatpush.bf16.msra.mxu1 %v4206_v15  ;;  %3064 = vmatpush.bf16.msrb.mxu0 %v4230_v18  ;;  %v4241_v18 = vld [vmem:[%s4816_s12 + $0x220] sm:$0xff] }
 0x656   : > { %3036 = vmatpush.bf16.msra.mxu2 %v4214_v23  ;;  %3050 = vmatpush.bf16.msra.mxu3 %v4222_v24  ;;  %v1471_v23 = vperm.slane %v5207_v43, 6 }
 0x659   : > { %3023 = vmatpush.bf16.msra.mxu1 %v4205_v16  ;;  %3065 = vmatpush.bf16.msrb.mxu0 %v4229_v22  ;;  %v4265_v22 = vld [vmem:[%s4816_s12 + $0x2e0] sm:$0xff] }
 0x65a   : > { %3037 = vmatpush.bf16.msra.mxu2 %v4213_v45  ;;  %3051 = vmatpush.bf16.msra.mxu3 %v4221_v35  ;;  %v4250_v45 = vld [vmem:[%s4816_s12 + $0x268] sm:$0xff] }
 0x678   : > { %v1669_v25 = vpop.f32.mrf.mxu1 }
 0x679   : > { %v1711_v44 = vpop.f32.mrf.mxu0  ;;  %v1670_v29 = vadd.f32 %v1669_v25, %v1465_v26 }
 0x67a   : > { %v1712_v31 = vadd.f32 %v1711_v44, %v1468_v27  ;;  %v4258_v44 = vld [vmem:[%s4816_s12 + $0x2a8] sm:$0xff] }
 0x67b   : > { %v1884_v41 = vmax.f32 %v1670_v29, 0.0 }
 0x67c   : > { %v1887_v46 = vmax.f32 %v1712_v31, 0.0  ;;  %v4264_v31 = vld [vmem:[%s4816_s12 + $0x2d8] sm:$0xff] }
 0x67e   : > { %v1683_v28 = vpop.f32.mrf.mxu2 }
 0x67f   : > { %v1697_v30 = vpop.f32.mrf.mxu3  ;;  %v1684_v49 = vadd.f32 %v1683_v28, %v1466_v14  ;;  %v4240_v28 = vld [vmem:[%s4816_s12 + $0x218] sm:$0xff] }
 0x680   : > { %v1671_v32 = vpop.f32.mrf.mxu1  ;;  %v1698_v17 = vadd.f32 %v1697_v30, %v1467_v37 }
 0x681   : > { %v1672_v34 = vadd.f32 %v1671_v32, %v1465_v26  ;;  %v1713_v36 = vpop.f32.mrf.mxu0  ;;  %v1885_v57 = vmax.f32 %v1684_v49, 0.0 }
 0x682   : > { %v1714_v40 = vadd.f32 %v1713_v36, %v1468_v27  ;;  %v1886_v61 = vmax.f32 %v1698_v17, 0.0 }
 0x683   : > { %v1900_v21 = vmax.f32 %v1672_v34, 0.0  ;;  %v4249_v34 = vld [vmem:[%s4816_s12 + $0x260] sm:$0xff] }
 0x684   : > { %v1903_v47 = vmax.f32 %v1714_v40, 0.0  ;;  %v4257_v40 = vld [vmem:[%s4816_s12 + $0x2a0] sm:$0xff] }
 0x685   : > { %v1916_v50 = vpack.c.bf16 %v1900_v21, %v1884_v41  ;;  %v5236_v21 = vld [vmem:[%s4850_s2 + $0x8] sm:$0xff] }
 0x686   : > { %v1919_v51 = vpack.c.bf16 %v1903_v47, %v1887_v46  ;;  %v1685_v33 = vpop.f32.mrf.mxu2  ;;  %v4239_v47 = vld [vmem:[%s4816_s12 + $0x210] sm:$0xff] }
 0x687   : > { %v1686_v52 = vadd.f32 %v1685_v33, %v1466_v14  ;;  %v1699_v53 = vpop.f32.mrf.mxu3  ;;  %2968 = vmatmul.bf16.vlgmr.msrb.gmra.mxu1 %v1916_v50  ;;  %v4248_v33 = vld [vmem:[%s4816_s12 + $0x258] sm:$0xff] }
 0x688   : > { %v1700_v54 = vadd.f32 %v1699_v53, %v1467_v37  ;;  %3010 = vmatmul.bf16.vlgmr.msra.gmra.mxu0 %v1919_v51  ;;  %3072 = vmatpush.bf16.msrb.mxu1 %v4244_v48  ;;  %v1725_v55 = vpop.f32.mrf.mxu1  ;;  %v1473_v53 = vperm.slane %v5236_v21, 0 }
 0x689   : > { %v1901_v58 = vmax.f32 %v1686_v52, 0.0  ;;  %3114 = vmatpush.bf16.msra.mxu0 %v4268_v42  ;;  %v1767_v59 = vpop.f32.mrf.mxu0  ;;  %v1726_v4 = vadd.f32 %v1725_v55, %v1469_v1  ;;  %v4263_v42 = vld [vmem:[%s4816_s12 + $0x2d0] sm:$0xff] }
 0x68a   : > { %v1902_v62 = vmax.f32 %v1700_v54, 0.0  ;;  %v1768_v5 = vadd.f32 %v1767_v59, %v1472_v6  ;;  %v4256_v54 = vld [vmem:[%s4816_s12 + $0x298] sm:$0xff] }
 0x68b   : > { %v1917_v0 = vpack.c.bf16 %v1901_v58, %v1885_v57  ;;  %v1888_v35 = vmax.f32 %v1726_v4, 0.0  ;;  %v4238_v57 = vld [vmem:[%s4816_s12 + $0x208] sm:$0xff] }
 0x68c   : > { %v1918_v3 = vpack.c.bf16 %v1902_v62, %v1886_v61  ;;  %3073 = vmatpush.bf16.msrb.mxu1 %v4243_v56  ;;  %v1891_v26 = vmax.f32 %v1768_v5, 0.0  ;;  %v1476_v56 = vperm.slane %v5236_v21, 3  ;;  %v4262_v58 = vld [vmem:[%s4816_s12 + $0x2c8] sm:$0xff] }
 0x68d   : > { %3115 = vmatpush.bf16.msra.mxu0 %v4267_v60  ;;  %2982 = vmatmul.bf16.vlgmr.msrb.gmra.mxu2 %v1917_v0  ;;  %v4247_v60 = vld [vmem:[%s4816_s12 + $0x250] sm:$0xff] }
 0x68e   : > { %2996 = vmatmul.bf16.vlgmr.msrb.gmra.mxu3 %v1918_v3  ;;  %3086 = vmatpush.bf16.msrb.mxu2 %v4252_v63  ;;  %v1739_v9 = vpop.f32.mrf.mxu2  ;;  %v4255_v63 = vld [vmem:[%s4816_s12 + $0x290] sm:$0xff]  ;;  %v1474_v3 = vperm.slane %v5236_v21, 1 }
 0x68f   : > { %3100 = vmatpush.bf16.msrb.mxu3 %v4260_v2  ;;  %v1753_v11 = vpop.f32.mrf.mxu3  ;;  %v1740_v29 = vadd.f32 %v1739_v9, %v1470_v19  ;;  %v4237_v2 = vld [vmem:[%s4816_s12 + $0x200] sm:$0xff]  ;;  %v4276_v9 = vld [vmem:[%s4816_s12 + $0x338] sm:$0xff] }
 0x690   : > { %3074 = vmatpush.bf16.msrb.mxu1 %v4242_v7  ;;  %v1727_v15 = vpop.f32.mrf.mxu1  ;;  %v1754_v43 = vadd.f32 %v1753_v11, %v1471_v23  ;;  %v4300_v11 = vld [vmem:[%s4816_s12 + $0x3f8] sm:$0xff] }
 0x691   : > { %3116 = vmatpush.bf16.msra.mxu0 %v4266_v8  ;;  %v1728_v20 = vadd.f32 %v1727_v15, %v1469_v1  ;;  %v1769_v16 = vpop.f32.mrf.mxu0  ;;  %v1889_v48 = vmax.f32 %v1740_v29, 0.0  ;;  %v4261_v8 = vld [vmem:[%s4816_s12 + $0x2c0] sm:$0xff]  ;;  %v4284_v29 = vld [vmem:[%s4816_s12 + $0x378] sm:$0xff] }
 0x692   : > { %v1770_v24 = vadd.f32 %v1769_v16, %v1472_v6  ;;  %3087 = vmatpush.bf16.msrb.mxu2 %v4251_v10  ;;  %v1890_v17 = vmax.f32 %v1754_v43, 0.0  ;;  %v1475_v10 = vperm.slane %v5236_v21, 2 }
 0x693   : > { %v1904_v25 = vmax.f32 %v1728_v20, 0.0  ;;  %3101 = vmatpush.bf16.msrb.mxu3 %v4259_v13  ;;  %v4246_v13 = vld [vmem:[%s4816_s12 + $0x248] sm:$0xff] }
 0x694   : > { %v1907_v27 = vmax.f32 %v1770_v24, 0.0  ;;  %3075 = vmatpush.bf16.msrb.mxu1 %v4241_v18  ;;  %v4254_v18 = vld [vmem:[%s4816_s12 + $0x288] sm:$0xff] }
 0x695   : > { %v1920_v30 = vpack.c.bf16 %v1904_v25, %v1888_v35  ;;  %3117 = vmatpush.bf16.msra.mxu0 %v4265_v22  ;;  %v4299_v25 = vld [vmem:[%s4816_s12 + $0x3f0] sm:$0xff] }
 0x696   : > { %v1923_v32 = vpack.c.bf16 %v1907_v27, %v1891_v26  ;;  %3088 = vmatpush.bf16.msrb.mxu2 %v4250_v45  ;;  %v1741_v14 = vpop.f32.mrf.mxu2 }
 0x697   : > { %3102 = vmatpush.bf16.msrb.mxu3 %v4258_v44  ;;  %v1742_v36 = vadd.f32 %v1741_v14, %v1470_v19  ;;  %v1755_v37 = vpop.f32.mrf.mxu3  ;;  %3024 = vmatmul.bf16.vlgmr.msra.gmra.mxu1 %v1920_v30  ;;  %v4245_v44 = vld [vmem:[%s4816_s12 + $0x240] sm:$0xff]  ;;  %v4274_v14 = vld [vmem:[%s4816_s12 + $0x328] sm:$0xff] }
 0x698   : > { %v1756_v41 = vadd.f32 %v1755_v37, %v1471_v23  ;;  %3066 = vmatmul.bf16.vlgmr.msrb.gmra.mxu0 %v1923_v32  ;;  %3076 = vmatpush.bf16.msrb.mxu1 %v4240_v28  ;;  %v1781_v46 = vpop.f32.mrf.mxu1  ;;  %v4275_v23 = vld [vmem:[%s4816_s12 + $0x330] sm:$0xff]  ;;  %v4253_v28 = vld [vmem:[%s4816_s12 + $0x280] sm:$0xff]  ;;  %v4298_v37 = vld [vmem:[%s4816_s12 + $0x3e8] sm:$0xff] }
 0x699   : > { %v1905_v49 = vmax.f32 %v1742_v36, 0.0  ;;  %3118 = vmatpush.bf16.msra.mxu0 %v4264_v31  ;;  %v1823_v50 = vpop.f32.mrf.mxu0  ;;  %v1782_v61 = vadd.f32 %v1781_v46, %v1473_v53  ;;  %v4292_v31 = vld [vmem:[%s4816_s12 + $0x3b8] sm:$0xff] }
 0x69a   : > { %v1906_v51 = vmax.f32 %v1756_v41, 0.0  ;;  %3089 = vmatpush.bf16.msrb.mxu2 %v4249_v34  ;;  %v1824_v0 = vadd.f32 %v1823_v50, %v1476_v56  ;;  %v4283_v41 = vld [vmem:[%s4816_s12 + $0x370] sm:$0xff] }
 0x69b   : > { %v1921_v52 = vpack.c.bf16 %v1905_v49, %v1889_v48  ;;  %3103 = vmatpush.bf16.msrb.mxu3 %v4257_v40  ;;  %v1892_v5 = vmax.f32 %v1782_v61, 0.0  ;;  %v4273_v49 = vld [vmem:[%s4816_s12 + $0x320] sm:$0xff]  ;;  %v1477_v61 = vperm.slane %v5236_v21, 4 }
 0x69c   : > { %v1922_v55 = vpack.c.bf16 %v1906_v51, %v1890_v17  ;;  %3077 = vmatpush.bf16.msrb.mxu1 %v4239_v47  ;;  %v1895_v19 = vmax.f32 %v1824_v0, 0.0  ;;  %v4291_v47 = vld [vmem:[%s4816_s12 + $0x3b0] sm:$0xff]  ;;  %v4282_v17 = vld [vmem:[%s4816_s12 + $0x368] sm:$0xff]  ;;  %v1480_v0 = vperm.slane %v5236_v21, 7 }
 0x69d   : > { %3119 = vmatpush.bf16.msra.mxu0 %v4263_v42  ;;  %3038 = vmatmul.bf16.vlgmr.msra.gmra.mxu2 %v1921_v52  ;;  %v4297_v42 = vld [vmem:[%s4816_s12 + $0x3e0] sm:$0xff]  ;;  %v4290_v51 = vld [vmem:[%s4816_s12 + $0x3a8] sm:$0xff]  ;;  %v4296_v52 = vld [vmem:[%s4816_s12 + $0x3d8] sm:$0xff] }
 0x69e   : > { %3052 = vmatmul.bf16.vlgmr.msra.gmra.mxu3 %v1922_v55  ;;  %3090 = vmatpush.bf16.msrb.mxu2 %v4248_v33  ;;  %v1795_v59 = vpop.f32.mrf.mxu2  ;;  %v4272_v33 = vld [vmem:[%s4816_s12 + $0x318] sm:$0xff] }
 0x69f   : > { %3104 = vmatpush.bf16.msrb.mxu3 %v4256_v54  ;;  %v1809_v62 = vpop.f32.mrf.mxu3  ;;  %v1796_v16 = vadd.f32 %v1795_v59, %v1474_v3  ;;  %v4281_v54 = vld [vmem:[%s4816_s12 + $0x360] sm:$0xff] }
 0x6a0   : > { %3078 = vmatpush.bf16.msrb.mxu1 %v4238_v57  ;;  %v1783_v1 = vpop.f32.mrf.mxu1  ;;  %v1810_v24 = vadd.f32 %v1809_v62, %v1475_v10  ;;  %v4271_v57 = vld [vmem:[%s4816_s12 + $0x310] sm:$0xff] }
 0x6a1   : > { %3120 = vmatpush.bf16.msra.mxu0 %v4262_v58  ;;  %v1784_v6 = vadd.f32 %v1783_v1, %v1473_v53  ;;  %v1825_v7 = vpop.f32.mrf.mxu0  ;;  %v1893_v43 = vmax.f32 %v1796_v16, 0.0  ;;  %v4295_v58 = vld [vmem:[%s4816_s12 + $0x3d0] sm:$0xff]  ;;  %v4270_v1 = vld [vmem:[%s4816_s12 + $0x308] sm:$0xff] }
 0x6a2   : > { %v1826_v4 = vadd.f32 %v1825_v7, %v1476_v56  ;;  %3091 = vmatpush.bf16.msrb.mxu2 %v4247_v60  ;;  %v1894_v34 = vmax.f32 %v1810_v24, 0.0  ;;  %v4289_v56 = vld [vmem:[%s4816_s12 + $0x3a0] sm:$0xff]  ;;  %v4280_v60 = vld [vmem:[%s4816_s12 + $0x358] sm:$0xff]  ;;  %v4279_v7 = vld [vmem:[%s4816_s12 + $0x350] sm:$0xff] }
 0x6a3   : > { %v1908_v15 = vmax.f32 %v1784_v6, 0.0  ;;  %3105 = vmatpush.bf16.msrb.mxu3 %v4255_v63  ;;  %v4288_v63 = vld [vmem:[%s4816_s12 + $0x398] sm:$0xff]  ;;  %v4278_v16 = vld [vmem:[%s4816_s12 + $0x348] sm:$0xff] }
 0x6a4   : > { %v1911_v20 = vmax.f32 %v1826_v4, 0.0  ;;  %3079 = vmatpush.bf16.msrb.mxu1 %v4237_v2  ;;  %v4286_v24 = vld [vmem:[%s4816_s12 + $0x388] sm:$0xff] }
 0x6a5   : > { %v1924_v22 = vpack.c.bf16 %v1908_v15, %v1892_v5  ;;  %3121 = vmatpush.bf16.msra.mxu0 %v4261_v8 }
 0x6a6   : > { %v1927_v45 = vpack.c.bf16 %v1911_v20, %v1895_v19  ;;  %3092 = vmatpush.bf16.msrb.mxu2 %v4246_v13  ;;  %v1797_v35 = vpop.f32.mrf.mxu2  ;;  %v1478_v13 = vperm.slane %v5236_v21, 5  ;;  %v1479_v19 = vperm.slane %v5236_v21, 6 }
 0x6a7   : > { %3106 = vmatpush.bf16.msrb.mxu3 %v4254_v18  ;;  %v1798_v26 = vadd.f32 %v1797_v35, %v1474_v3  ;;  %v1811_v27 = vpop.f32.mrf.mxu3  ;;  %3080 = vmatmul.bf16.vlgmr.msrb.gmra.mxu1 %v1924_v22  ;;  %v4294_v3 = vld [vmem:[%s4816_s12 + $0x3c8] sm:$0xff]  ;;  %v4293_v18 = vld [vmem:[%s4816_s12 + $0x3c0] sm:$0xff] }
 0x6a8   : > { %3128 = vmatpush.bf16.msra.mxu1 %v4276_v9  ;;  %v1812_v30 = vadd.f32 %v1811_v27, %v1475_v10  ;;  %3122 = vmatmul.bf16.vlgmr.msra.gmra.mxu0 %v1927_v45  ;;  %v1837_v48 = vpop.f32.mrf.mxu1  ;;  %v4287_v9 = vld [vmem:[%s4816_s12 + $0x390] sm:$0xff] }
 0x6a9   : > { %3170 = vmatpush.bf16.msrb.mxu0 %v4300_v11  ;;  %v1909_v32 = vmax.f32 %v1798_v26, 0.0  ;;  %v1879_v50 = vpop.f32.mrf.mxu0  ;;  %v1838_v8 = vadd.f32 %v1837_v48, %v1477_v61  ;;  %v4269_v11 = vld [vmem:[%s4816_s12 + $0x300] sm:$0xff] }
 0x6aa   : > { %v1910_v36 = vmax.f32 %v1812_v30, 0.0  ;;  %3093 = vmatpush.bf16.msrb.mxu2 %v4245_v44  ;;  %v1880_v10 = vadd.f32 %v1879_v50, %v1480_v0 }
 0x6ab   : > { %v1925_v40 = vpack.c.bf16 %v1909_v32, %v1893_v43  ;;  %3107 = vmatpush.bf16.msrb.mxu3 %v4253_v28  ;;  %v1896_v22 = vmax.f32 %v1838_v8, 0.0  ;;  %v4277_v28 = vld [vmem:[%s4816_s12 + $0x340] sm:$0xff] }
 0x6ac   : > { %3129 = vmatpush.bf16.msra.mxu1 %v4275_v23  ;;  %v1926_v46 = vpack.c.bf16 %v1910_v36, %v1894_v34  ;;  %v1899_v45 = vmax.f32 %v1880_v10, 0.0 }
 0x6ad   : > { %3171 = vmatpush.bf16.msrb.mxu0 %v4299_v25  ;;  %3094 = vmatmul.bf16.vlgmr.msrb.gmra.mxu2 %v1925_v40 }
 0x6ae   : > { %3142 = vmatpush.bf16.msra.mxu2 %v4284_v29  ;;  %3108 = vmatmul.bf16.vlgmr.msrb.gmra.mxu3 %v1926_v46  ;;  %v1851_v53 = vpop.f32.mrf.mxu2  ;;  %v4285_v29 = vld [vmem:[%s4816_s12 + $0x380] sm:$0xff] }
 0x6af   : > { %3156 = vmatpush.bf16.msra.mxu3 %v4292_v31  ;;  %v1865_v55 = vpop.f32.mrf.mxu3  ;;  %v1852_v25 = vadd.f32 %v1851_v53, %v1478_v13 }
 0x6b0   : > { %3130 = vmatpush.bf16.msra.mxu1 %v4274_v14  ;;  %v1839_v59 = vpop.f32.mrf.mxu1  ;;  %v1866_v26 = vadd.f32 %v1865_v55, %v1479_v19 }
 0x6b1   : > { %3172 = vmatpush.bf16.msrb.mxu0 %v4298_v37  ;;  %v1881_v62 = vpop.f32.mrf.mxu0  ;;  %v1840_v2 = vadd.f32 %v1839_v59, %v1477_v61  ;;  %v1897_v31 = vmax.f32 %v1852_v25, 0.0 }
 0x6b2   : > { %3143 = vmatpush.bf16.msra.mxu2 %v4283_v41  ;;  %v1882_v6 = vadd.f32 %v1881_v62, %v1480_v0  ;;  %v1898_v43 = vmax.f32 %v1866_v26, 0.0 }
 0x6b3   : > { %3157 = vmatpush.bf16.msra.mxu3 %v4291_v47  ;;  %v1912_v5 = vmax.f32 %v1840_v2, 0.0 }
 0x6b4   : > { %3131 = vmatpush.bf16.msra.mxu1 %v4273_v49  ;;  %v1915_v20 = vmax.f32 %v1882_v6, 0.0  ;;  %v4368_v49 = vld [vmem:[%s679_s0] ss:$0 sm:$0xff] }
 0x6b5   : > { %3173 = vmatpush.bf16.msrb.mxu0 %v4297_v42  ;;  %v1928_v44 = vpack.c.bf16 %v1912_v5, %v1896_v22 }
 0x6b6   : > { %3144 = vmatpush.bf16.msra.mxu2 %v4282_v17  ;;  %v1853_v4 = vpop.f32.mrf.mxu2  ;;  %v1931_v27 = vpack.c.bf16 %v1915_v20, %v1899_v45 }
 0x6b7   : > { %3158 = vmatpush.bf16.msra.mxu3 %v4290_v51  ;;  %v1867_v15 = vpop.f32.mrf.mxu3  ;;  %v1854_v23 = vadd.f32 %v1853_v4, %v1478_v13 }
 0x6b8   : > { %3132 = vmatpush.bf16.msra.mxu1 %v4272_v33  ;;  %v1868_v35 = vadd.f32 %v1867_v15, %v1479_v19 }
 0x6b9   : > { %3174 = vmatpush.bf16.msrb.mxu0 %v4296_v52  ;;  %v1913_v21 = vmax.f32 %v1854_v23, 0.0 }
 0x6ba   : > { %3145 = vmatpush.bf16.msra.mxu2 %v4281_v54  ;;  %v1914_v30 = vmax.f32 %v1868_v35, 0.0 }
 0x6bb   : > { %3159 = vmatpush.bf16.msra.mxu3 %v4289_v56  ;;  %v1929_v32 = vpack.c.bf16 %v1913_v21, %v1897_v31 }
 0x6bc   : > { %3133 = vmatpush.bf16.msra.mxu1 %v4271_v57  ;;  %v1930_v14 = vpack.c.bf16 %v1914_v30, %v1898_v43 }
 0x6bd   : > { %3175 = vmatpush.bf16.msrb.mxu0 %v4295_v58 }
 0x6be   : > { %3146 = vmatpush.bf16.msra.mxu2 %v4280_v60 }
 0x6bf   : > { %3160 = vmatpush.bf16.msra.mxu3 %v4288_v63 }
 0x6c0   : > { %3134 = vmatpush.bf16.msra.mxu1 %v4270_v1 }
 0x6c1   : > { %3176 = vmatpush.bf16.msrb.mxu0 %v4294_v3 }
 0x6c2   : > { %3147 = vmatpush.bf16.msra.mxu2 %v4279_v7 }
 0x6c3   : > { %3161 = vmatpush.bf16.msra.mxu3 %v4287_v9 }
 0x6c4   : > { %3135 = vmatpush.bf16.msra.mxu1 %v4269_v11 }
 0x6c5   : > { %3177 = vmatpush.bf16.msrb.mxu0 %v4293_v18 }
 0x6c6   : > { %3148 = vmatpush.bf16.msra.mxu2 %v4278_v16 }
 0x6c7   : > { %3162 = vmatpush.bf16.msra.mxu3 %v4286_v24  ;;  %3136 = vmatmul.bf16.vlgmr.msra.gmra.mxu1 %v1928_v44 }
 0x6c8   : > { %3178 = vmatmul.bf16.vlgmr.msrb.gmra.mxu0 %v1931_v27 }
 0x6ca   : > { %3149 = vmatpush.bf16.msra.mxu2 %v4277_v28 }
 0x6cb   : > { %3163 = vmatpush.bf16.msra.mxu3 %v4285_v29 }
 0x6cd   : > { %3150 = vmatmul.bf16.vlgmr.msra.gmra.mxu2 %v1929_v32 }
 0x6ce   : > { %3164 = vmatmul.bf16.vlgmr.msra.gmra.mxu3 %v1930_v14 }
 0x704   : > { %v2969_v34 = vpop.f32.mrf.mxu1 }
 0x705   : > { %v3011_v40 = vpop.f32.mrf.mxu0  ;;  %v2970_v42 = vadd.f32 %v4368_v49, %v2969_v34 }
 0x70c   : > { %v2971_v41 = vpop.f32.mrf.mxu1 }
 0x70d   : > { %v3013_v48 = vpop.f32.mrf.mxu0  ;;  %v2972_v55 = vadd.f32 %v4368_v49, %v2971_v41 }
 0x710   : > { %v2983_v36 = vpop.f32.mrf.mxu2 }
 0x711   : > { %v2997_v37 = vpop.f32.mrf.mxu3  ;;  %v2984_v17 = vadd.f32 %v2983_v36, %v2970_v42 }
 0x713   : > { %v2998_v53 = vadd.f32 %v2997_v37, %v2984_v17 }
 0x714   : > { %v3025_v50 = vpop.f32.mrf.mxu1 }
 0x715   : > { %v3067_v52 = vpop.f32.mrf.mxu0  ;;  %v3012_v56 = vadd.f32 %v3011_v40, %v2998_v53 }
 0x717   : > { %v3026_v59 = vadd.f32 %v3025_v50, %v3012_v56 }
 0x718   : > { %v2985_v46 = vpop.f32.mrf.mxu2 }
 0x719   : > { %v2999_v47 = vpop.f32.mrf.mxu3  ;;  %v2986_v57 = vadd.f32 %v2985_v46, %v2972_v55 }
 0x71b   : > { %v3000_v60 = vadd.f32 %v2999_v47, %v2986_v57 }
 0x71c   : > { %v3027_v54 = vpop.f32.mrf.mxu1 }
 0x71d   : > { %v3069_v62 = vpop.f32.mrf.mxu0  ;;  %v3014_v1 = vadd.f32 %v3013_v48, %v3000_v60 }
 0x71f   : > { %v3028_v3 = vadd.f32 %v3027_v54, %v3014_v1 }
 0x720   : > { %v3039_v51 = vpop.f32.mrf.mxu2 }
 0x721   : > { %v3053_v33 = vpop.f32.mrf.mxu3  ;;  %v3040_v63 = vadd.f32 %v3039_v51, %v3026_v59 }
 0x723   : > { %v3054_v2 = vadd.f32 %v3053_v33, %v3040_v63 }
 0x724   : > { %v3081_v0 = vpop.f32.mrf.mxu1 }
 0x725   : > { %v3068_v7 = vadd.f32 %v3067_v52, %v3054_v2  ;;  %v3123_v10 = vpop.f32.mrf.mxu0 }
 0x727   : > { %v3082_v11 = vadd.f32 %v3081_v0, %v3068_v7 }
 0x728   : > { %v3041_v58 = vpop.f32.mrf.mxu2 }
 0x729   : > { %v3055_v61 = vpop.f32.mrf.mxu3  ;;  %v3042_v8 = vadd.f32 %v3041_v58, %v3028_v3 }
 0x72b   : > { %v3056_v13 = vadd.f32 %v3055_v61, %v3042_v8  ;;  %v4370_v8 = vld [vmem:[%s685_s9] ss:$0 sm:$0xff] }
 0x72c   : > { %v3083_v4 = vpop.f32.mrf.mxu1 }
 0x72d   : > { %v3070_v15 = vadd.f32 %v3069_v62, %v3056_v13  ;;  %v3125_v16 = vpop.f32.mrf.mxu0 }
 0x72f   : > { %v3084_v23 = vadd.f32 %v3083_v4, %v3070_v15 }
 0x730   : > { %v3095_v6 = vpop.f32.mrf.mxu2 }
 0x731   : > { %v3109_v9 = vpop.f32.mrf.mxu3  ;;  %v3096_v5 = vadd.f32 %v3095_v6, %v3082_v11  ;;  %v4369_v6 = vld [vmem:[%s682_s7] ss:$0 sm:$0xff] }
 0x733   : > { %v3110_v19 = vadd.f32 %v3109_v9, %v3096_v5 }
 0x735   : > { %v3124_v45 = vadd.f32 %v3123_v10, %v3110_v19 }
 0x738   : > { %v3097_v18 = vpop.f32.mrf.mxu2 }
 0x739   : > { %v3111_v20 = vpop.f32.mrf.mxu3  ;;  %v3098_v24 = vadd.f32 %v3097_v18, %v3084_v23 }
 0x73b   : > { %v3112_v44 = vadd.f32 %v3111_v20, %v3098_v24 }
 0x73d   : > { %v3126_v30 = vadd.f32 %v3125_v16, %v3112_v44 }
 0x744   : > { %v3137_v22 = vpop.f32.mrf.mxu1 }
 0x745   : > { %v3138_v35 = vadd.f32 %v3137_v22, %v3124_v45  ;;  %v3179_v28 = vpop.f32.mrf.mxu0 }
 0x74c   : > { %v3139_v29 = vpop.f32.mrf.mxu1 }
 0x74d   : > { %v3140_v43 = vadd.f32 %v3139_v29, %v3126_v30  ;;  %v3181_v41 = vpop.f32.mrf.mxu0 }
 0x750   : > { %v3151_v25 = vpop.f32.mrf.mxu2 }
 0x751   : > { %v3152_v26 = vadd.f32 %v3151_v25, %v3138_v35  ;;  %v3165_v27 = vpop.f32.mrf.mxu3 }
 0x753   : > { %v3166_v21 = vadd.f32 %v3165_v27, %v3152_v26 }
 0x755   : > { %v3180_v31 = vadd.f32 %v3179_v28, %v3166_v21 }
 0x757   : > { %v3184_v32 = vadd.f32 %v3180_v31, %v5075_v38 }
 0x758   : > { %v3153_v14 = vpop.f32.mrf.mxu2 }
 0x759   : > { %v3154_v34 = vadd.f32 %v3153_v14, %v3140_v43  ;;  %v3188_v36 = vsel %vm719_vm1, %v3184_v32, 0.0  ;;  %v3167_v37 = vpop.f32.mrf.mxu3 }
 0x75a   : > { %3189 = vadd.xlane.f32.xlu1 %v3188_v36 }
 0x75b   : > { %v3168_v40 = vadd.f32 %v3167_v37, %v3154_v34 }
 0x75d   : > { %v3182_v46 = vadd.f32 %v3181_v41, %v3168_v40 }
 0x75f   : > { %v3185_v47 = vadd.f32 %v3182_v46, %v5077_v39 }
 0x761   : > { %v3191_v48 = vsel %vm719_vm1, %v3185_v47, 0.0 }
 0x762   : > { %3192 = vadd.xlane.f32.xlu1 %v3191_v48 }
 0x7cd   : > { %v3190_v49 = vpop.xlane.xlu1 %3189 }
 0x7ce   : > { %v3194_v50 = vmul.f32 %v3190_v49, %v5005_v12 }
 0x7d0   : > { %v3196_v42 = vsub.f32 %v3184_v32, %v3194_v50 }
 0x7d2   : > { %v3198_v17 = vmul.f32 %v3196_v42, %v3196_v42 }
 0x7d4   : > { %v3200_v38 = vsel %vm719_vm1, %v3198_v17, 0.0 }
 0x7d5   : > { %3201 = vadd.xlane.f32.xlu1 %v3200_v38  ;;  %v3193_v51 = vpop.xlane.xlu1 %3192 }
 0x7d6   : > { %v3195_v33 = vmul.f32 %v3193_v51, %v5005_v12 }
 0x7d8   : > { %v3197_v52 = vsub.f32 %v3185_v47, %v3195_v33 }
 0x7da   : > { %v3199_v53 = vmul.f32 %v3197_v52, %v3197_v52 }
 0x7dc   : > { %v3203_v54 = vsel %vm719_vm1, %v3199_v53, 0.0 }
 0x7dd   : > { %3204 = vadd.xlane.f32.xlu1 %v3203_v54 }
 0x848   : > { %v3202_v39 = vpop.xlane.xlu1 %3201 }
 0x849   : > { %v3206_v55 = vmul.f32 %v3202_v39, %v5005_v12 }
 0x84b   : > { %v3208_v56 = vadd.f32 1e-05, %v3206_v55 }
 0x84d   : > { %4409 = vrsqrt.f32 %v3208_v56  ;;  %vm3216_vm12 = vweird.f32 %v3208_v56 }
 0x850   : > { %v3205_v57 = vpop.xlane.xlu1 %3204 }
 0x851   : > { %v3207_v58 = vmul.f32 %v3205_v57, %v5005_v12 }
 0x853   : > { %v4410_v59 = vpop.eup %4409  ;;  %v3209_v60 = vadd.f32 1e-05, %v3207_v58 }
 0x854   : > { %v3211_v61 = vmul.f32 %v4410_v59, %v3208_v56  ;;  %vm3217_vm11 = vweird.f32 %v4410_v59 }
 0x855   : > { %4411 = vrsqrt.f32 %v3209_v60  ;;  %vm3218_vm13 = vmor %vm3216_vm12, %vm3217_vm11  ;;  %vm3226_vm15 = vweird.f32 %v3209_v60 }
 0x856   : > { %v3212_v62 = vmul.f32 %v4410_v59, %v3211_v61 }
 0x858   : > { %v3213_v63 = vmul.f32 0.5, %v3212_v62 }
 0x85a   : > { %v3214_v0 = vsub.f32 1.5, %v3213_v63 }
 0x85b   : > { %v4412_v1 = vpop.eup %4411 }
 0x85c   : > { %v3215_v2 = vmul.f32 %v4410_v59, %v3214_v0  ;;  %v3221_v3 = vmul.f32 %v4412_v1, %v3209_v60  ;;  %vm3227_vm14 = vweird.f32 %v4412_v1 }
 0x85d   : > { %vm3228_vm0 = vmor %vm3226_vm15, %vm3227_vm14 }
 0x85e   : > { %v3219_v12 = vsel %vm3218_vm13, %v4410_v59, %v3215_v2  ;;  %v3222_v7 = vmul.f32 %v4412_v1, %v3221_v3 }
 0x85f   : > { %v3230_v9 = vmul.f32 %v3219_v12, %v3196_v42 }
 0x860   : > { %v3223_v10 = vmul.f32 0.5, %v3222_v7 }
 0x861   : > { %v3235_v4 = vmul.f32 %v4369_v6, %v3230_v9 }
 0x862   : > { %v3224_v11 = vsub.f32 1.5, %v3223_v10 }
 0x863   : > { %v3240_v13 = vadd.f32 %v4370_v8, %v3235_v4 }
 0x864   : > { %v3225_v5 = vmul.f32 %v4412_v1, %v3224_v11 }
 0x865   : > { %3242 = vst.msk [vmem:[#allocation2] sm:$0xff] %vm719_vm1, %v3240_v13 }
 0x866   : > { %3244 = vst.msk [vmem:[%s5395_s19] sm:$0xff] %vm719_vm1, %v3240_v13  ;;  %v3229_v15 = vsel %vm3228_vm0, %v4412_v1, %v3225_v5 }
 0x867   : > { %v3231_v18 = vmul.f32 %v3229_v15, %v3197_v52 }
 0x869   : > { %v3236_v19 = vmul.f32 %v4369_v6, %v3231_v18 }
 0x86b   : > { %v3241_v20 = vadd.f32 %v4370_v8, %v3236_v19 }
 0x86d   : > { %3243 = vst.msk [vmem:[#allocation2 + $0x8] sm:$0xff] %vm719_vm1, %v3241_v20 }
 0x86e   : > { %3245 = vst.msk [vmem:[%s5395_s19 + $0x8] sm:$0xff] %vm719_vm1, %v3241_v20 }
 0x86f PF: > { %s5396_s28 = sld [smem:[#allocation14_spill]]  ;;  %s5399_s25 = smov %s4567_s26 }
 0x870   : > { %s5397_s16 = sld [smem:[#allocation13_spill]] }
 0x871   : > { %s5398_s27 = sld [smem:[#allocation15_spill]] }
 0x875   : > { %p29_p10 = scmp.ge.s32.totalorder %s5396_s28, 4  }
 0x876   : > { %s5400_s26 = smov %s5397_s16 }
 0x877   :  { %31 = sbr.rel (!%p29_p10) target bundleno = 17 (0x11), region = 173 }
 0x87c   :  { %3257 = vsyncpa [#allocation4], 1 }
 0x87d   :  { %3259 = vsyncpa [#allocation4 + $0x1], 1 }
 0x87e   :  { %3260 = vsyncpa [#allocation6], 1 }
 0x87f   :  { %3262 = vsyncpa [#allocation6 + $0x1], 1 }
 0x880   :  { %3263 = vsyncpa [#allocation9], 1 }
 0x881   :  { %3265 = vsyncpa [#allocation9 + $0x1], 1 }

</bundles_post_ra>
